<compile_context>
chip_gen: v7x
topology: tpu7x:2x2x1
jax: 0.10.0
libtpu: 0.0.40
codegen_flags: <defaults>
</compile_context>

<pallas_src>
import math

import jax
import jax.numpy as jnp
from jax import lax
from jax.experimental import pallas as pl
from jax.experimental.pallas import tpu as pltpu

# ---------------- tiny BERT config ----------------
VOCAB = 100
HIDDEN = 32
HEADS = 2
HEAD_DIM = HIDDEN // HEADS
INTER = 64
LAYERS = 2
MAX_POS = 16
SEQ = 8
BATCH = 2
LN_EPS = 1e-12
ATT_SCALE = 1.0 / math.sqrt(HEAD_DIM)

# ---------------- weight-slab layout (single contiguous f32 operand) --------
SLAB_W = 3 * HIDDEN                 # 96 lanes (widest row: fused QKV)
HEAD_ROWS = 8                       # rows 0/1: emb LN gamma/beta, rest zero pad
# per-layer rows: 8 bias/LN rows, then Wqkv, Wo, W1, W2 (all 8-row aligned)
QKV_OFF = 8
WO_OFF = QKV_OFF + HIDDEN           # 40
W1_OFF = WO_OFF + HIDDEN            # 72
W2_OFF = W1_OFF + HIDDEN            # 104
LAYER_ROWS = W2_OFF + INTER         # 168
SLAB_ROWS = HEAD_ROWS + LAYERS * LAYER_ROWS   # 344


# ---------------- in-kernel helpers (plain jnp, traced inside Pallas) -------
def _layer_norm(x, gamma, beta):
    mu = jnp.mean(x, axis=-1, keepdims=True)
    var = jnp.mean((x - mu) * (x - mu), axis=-1, keepdims=True)
    return (x - mu) * lax.rsqrt(var + LN_EPS) * gamma + beta


def _gelu(x):
    # TODO(synk): HF BERT uses exact erf-GELU; tanh approximation (~1e-3 diff)
    # used here for a clean EUP lowering.  The in-file reference uses the same.
    c = 0.7978845608028654  # sqrt(2/pi)
    return 0.5 * x * (1.0 + jnp.tanh(c * (x + 0.044715 * x * x * x)))


# ---------------- the single fused Pallas kernel (one sentence per grid step)
def cosent_fused_kernel(emb_ref, mask_ref, slab_ref, out_ref):
    x = emb_ref[0]                                      # (S, H) pre-LN embeddings
    # additive key-padding bias built in-kernel from the raw attention mask
    key_bias = (1.0 - mask_ref[0]) * -10000.0           # (1, S)

    # ---- embedding LayerNorm ----
    x = _layer_norm(x, slab_ref[0:1, 0:HIDDEN], slab_ref[1:2, 0:HIDDEN])

    first = None
    for li in range(LAYERS):
        base = HEAD_ROWS + li * LAYER_ROWS
        b_qkv = slab_ref[base + 0:base + 1, :]                          # (1, 3H), q pre-scaled
        bo = slab_ref[base + 1:base + 2, 0:HIDDEN]
        ln1g = slab_ref[base + 2:base + 3, 0:HIDDEN]
        ln1b = slab_ref[base + 3:base + 4, 0:HIDDEN]
        b1 = slab_ref[base + 4:base + 5, 0:INTER]
        b2 = slab_ref[base + 5:base + 6, 0:HIDDEN]
        ln2g = slab_ref[base + 6:base + 7, 0:HIDDEN]
        ln2b = slab_ref[base + 7:base + 8, 0:HIDDEN]
        wqkv = slab_ref[base + QKV_OFF:base + QKV_OFF + HIDDEN, :]      # (H, 3H)
        wo = slab_ref[base + WO_OFF:base + WO_OFF + HIDDEN, 0:HIDDEN]   # (H, H)
        w1 = slab_ref[base + W1_OFF:base + W1_OFF + HIDDEN, 0:INTER]    # (H, INTER)
        w2 = slab_ref[base + W2_OFF:base + W2_OFF + INTER, 0:HIDDEN]    # (INTER, H)

        # ---- fused QKV projection: one MXU matmul for all heads ----
        qkv = jnp.dot(x, wqkv, preferred_element_type=jnp.float32) + b_qkv  # (S, 3H)

        ctxs = []
        for h in range(HEADS):
            lo, hi = h * HEAD_DIM, (h + 1) * HEAD_DIM
            qh = qkv[:, lo:hi]                              # (S, HD) already *ATT_SCALE
            kh = qkv[:, HIDDEN + lo:HIDDEN + hi]
            vh = qkv[:, 2 * HIDDEN + lo:2 * HIDDEN + hi]
            # scores: contract head_dim of q and k (no explicit transpose)
            s = lax.dot_general(qh, kh, (((1,), (1,)), ((), ())),
                                preferred_element_type=jnp.float32)     # (S, S)
            # No max-subtraction: scores are bounded tiny (layer-normed inputs,
            # 0.02-scale weights, folded ATT_SCALE); masked keys -> exp(-1e4)=0.
            p = jnp.exp(s + key_bias)
            p = p * pl.reciprocal(jnp.sum(p, axis=-1, keepdims=True), approx=True)
            ctxs.append(jnp.dot(p, vh, preferred_element_type=jnp.float32))  # (S, HD)

        # single output projection over lane-concatenated heads
        ctx = jnp.concatenate(ctxs, axis=-1)                                 # (S, H)
        attn = jnp.dot(ctx, wo, preferred_element_type=jnp.float32) + bo

        x1 = _layer_norm(x + attn, ln1g, ln1b)

        # ---- feed-forward ----
        h1 = _gelu(jnp.dot(x1, w1, preferred_element_type=jnp.float32) + b1)
        ffn = jnp.dot(h1, w2, preferred_element_type=jnp.float32) + b2
        x = _layer_norm(x1 + ffn, ln2g, ln2b)

        if li == 0:
            first = x              # hidden_states[1]

    last = x                       # hidden_states[-1]

    # "first-last-avg" pooling: mean over seq (incl. padded tokens, matching
    # torch.avg_pool1d), then average the two pooled vectors.
    pooled = 0.5 * (jnp.mean(first, axis=0, keepdims=True)
                    + jnp.mean(last, axis=0, keepdims=True))     # (1, H)
    out_ref[...] = pooled.reshape(1, 1, HIDDEN).astype(out_ref.dtype)


# ---------------- parameter packing: logical params -> one weight slab ------
def pack_params(params):
    f32 = jnp.float32

    def pad_row(v):
        v = jnp.asarray(v, f32).reshape(1, -1)
        return jnp.pad(v, ((0, 0), (0, SLAB_W - v.shape[1])))

    def pad_mat(m):
        m = jnp.asarray(m, f32)
        return jnp.pad(m, ((0, 0), (0, SLAB_W - m.shape[1])))

    rows = [pad_row(params["emb_ln_g"]), pad_row(params["emb_ln_b"]),
            jnp.zeros((HEAD_ROWS - 2, SLAB_W), f32)]
    for lp in params["layers"]:
        b_qkv = jnp.concatenate([lp["bq"] * ATT_SCALE, lp["bk"], lp["bv"]], axis=1)
        rows += [b_qkv.astype(f32),
                 pad_row(lp["bo"]), pad_row(lp["ln1_g"]), pad_row(lp["ln1_b"]),
                 pad_row(lp["b1"]), pad_row(lp["b2"]),
                 pad_row(lp["ln2_g"]), pad_row(lp["ln2_b"])]
        wqkv = jnp.concatenate([lp["wq"] * ATT_SCALE, lp["wk"], lp["wv"]], axis=1)
        rows += [wqkv.astype(f32), pad_mat(lp["wo"]), pad_mat(lp["w1"]), pad_mat(lp["w2"])]
    slab = jnp.concatenate(rows, axis=0).astype(f32)
    assert slab.shape == (SLAB_ROWS, SLAB_W)
    return slab


# ---------------- forward wrapper ----------------
def cosent_forward(params, slab, input_ids, attention_mask):
    """CoSent Model forward, encoder_type='fist-last-avg' — one fused kernel."""
    B, S = input_ids.shape

    # ---- embeddings (gathers are glue; everything else is in the kernel) ----
    word = params["word_emb"][input_ids]                       # (B, S, H)
    pos = params["pos_emb"][jnp.arange(S)][None, :, :]         # (1, S, H)
    tok = params["type_emb"][0][None, None, :]                 # (1, 1, H)
    emb = (word + pos + tok).astype(jnp.float32)               # (B, S, H)
    mask3 = attention_mask.astype(jnp.float32).reshape(B, 1, S)

    out = pl.pallas_call(
        cosent_fused_kernel,
        out_shape=jax.ShapeDtypeStruct((B, 1, HIDDEN), jnp.float32),
        grid_spec=pltpu.PrefetchScalarGridSpec(
            num_scalar_prefetch=0,
            grid=(B,),
            in_specs=[
                pl.BlockSpec((1, S, HIDDEN), lambda b: (b, 0, 0)),      # embeddings
                pl.BlockSpec((1, 1, S), lambda b: (b, 0, 0)),           # attention mask
                pl.BlockSpec((SLAB_ROWS, SLAB_W), lambda b: (0, 0)),    # weight slab
            ],
            out_specs=pl.BlockSpec((1, 1, HIDDEN), lambda b: (b, 0, 0)),
        ),
        compiler_params=pltpu.CompilerParams(
            dimension_semantics=("parallel",)),                # both TCs on v7x
    )(emb, mask3, slab)
    return out.reshape(B, HIDDEN)


# ---------------- pure-JAX reference (same math, logical params) ----------------
def _ref_forward(params, input_ids, attention_mask):
    B, S = input_ids.shape
    word = params["word_emb"][input_ids]
    pos = params["pos_emb"][jnp.arange(S)][None, :, :]
    tok = params["type_emb"][0][None, None, :]
    x = _layer_norm((word + pos + tok).astype(jnp.float32),
                    params["emb_ln_g"], params["emb_ln_b"])
    mask_bias = ((1.0 - attention_mask.astype(jnp.float32)) * -10000.0)[:, None, :]
    hs = [x]
    for li in range(LAYERS):
        lp = params["layers"][li]
        q = x @ lp["wq"] + lp["bq"]
        k = x @ lp["wk"] + lp["bk"]
        v = x @ lp["wv"] + lp["bv"]
        ctxs = []
        for h in range(HEADS):
            lo, hi = h * HEAD_DIM, (h + 1) * HEAD_DIM
            s = jnp.einsum("bqd,bkd->bqk", q[..., lo:hi], k[..., lo:hi]) * ATT_SCALE
            s = s + mask_bias
            p = jax.nn.softmax(s, axis=-1)
            ctxs.append(jnp.einsum("bqk,bkd->bqd", p, v[..., lo:hi]))
        ctx = jnp.concatenate(ctxs, axis=-1)
        x1 = _layer_norm(x + ctx @ lp["wo"] + lp["bo"], lp["ln1_g"], lp["ln1_b"])
        ffn = _gelu(x1 @ lp["w1"] + lp["b1"]) @ lp["w2"] + lp["b2"]
        x = _layer_norm(x1 + ffn, lp["ln2_g"], lp["ln2_b"])
        hs.append(x)
    return 0.5 * (jnp.mean(hs[1], axis=1) + jnp.mean(hs[-1], axis=1))


# ---------------- deterministic parameter init ----------------
def init_params(key):
    def nrm(k, shape):
        return (0.02 * jax.random.normal(k, shape)).astype(jnp.float32)

    keys = jax.random.split(key, 3 + LAYERS)
    params = {
        "word_emb": nrm(keys[0], (VOCAB, HIDDEN)),
        "pos_emb": nrm(keys[1], (MAX_POS, HIDDEN)),
        "type_emb": nrm(keys[2], (2, HIDDEN)),
        "emb_ln_g": jnp.ones((1, HIDDEN), jnp.float32),
        "emb_ln_b": jnp.zeros((1, HIDDEN), jnp.float32),
        "layers": [],
    }
    for li in range(LAYERS):
        lk = jax.random.split(keys[3 + li], 6)
        params["layers"].append({
            "wq": nrm(lk[0], (HIDDEN, HIDDEN)), "bq": jnp.zeros((1, HIDDEN), jnp.float32),
            "wk": nrm(lk[1], (HIDDEN, HIDDEN)), "bk": jnp.zeros((1, HIDDEN), jnp.float32),
            "wv": nrm(lk[2], (HIDDEN, HIDDEN)), "bv": jnp.zeros((1, HIDDEN), jnp.float32),
            "wo": nrm(lk[3], (HIDDEN, HIDDEN)), "bo": jnp.zeros((1, HIDDEN), jnp.float32),
            "ln1_g": jnp.ones((1, HIDDEN), jnp.float32),
            "ln1_b": jnp.zeros((1, HIDDEN), jnp.float32),
            "w1": nrm(lk[4], (HIDDEN, INTER)), "b1": jnp.zeros((1, INTER), jnp.float32),
            "w2": nrm(lk[5], (INTER, HIDDEN)), "b2": jnp.zeros((1, HIDDEN), jnp.float32),
            "ln2_g": jnp.ones((1, HIDDEN), jnp.float32),
            "ln2_b": jnp.zeros((1, HIDDEN), jnp.float32),
        })
    return params


if __name__ == "__main__":
    key = jax.random.PRNGKey(0)
    pkey, ikey = jax.random.split(key)
    params = init_params(pkey)
    slab = pack_params(params)

    input_ids = jax.random.randint(ikey, (BATCH, SEQ), 0, VOCAB, dtype=jnp.int32)
    attention_mask = jnp.ones((BATCH, SEQ), dtype=jnp.int32)
    attention_mask = attention_mask.at[1, SEQ - 2:].set(0)  # pad tail of example 1

    fwd = jax.jit(cosent_forward)
    out = fwd(params, slab, input_ids, attention_mask)
    out = jax.block_until_ready(out)

    ref = _ref_forward(params, input_ids, attention_mask)
    assert out.shape == (BATCH, HIDDEN)
    assert jnp.allclose(out, ref, atol=2e-4, rtol=2e-4), "mismatch vs JAX reference"
    print("KERNEL_OK")
</pallas_src>

<mosaic_0001>
module attributes {stable_mosaic.version = 11 : i64} {
  func.func @cosent_fused_kernel(%arg0: i32, %arg1: memref<1x8x32xf32, #tpu.memory_space<vmem>>, %arg2: memref<1x1x8xf32, #tpu.memory_space<vmem>>, %arg3: memref<344x96xf32, #tpu.memory_space<vmem>>, %arg4: memref<1x1x32xf32, #tpu.memory_space<vmem>>) attributes {dimension_semantics = [#tpu.dimension_semantics<parallel>], iteration_bounds = array<i64: 2>, scalar_prefetch = 0 : i64, scratch_operands = 0 : i64, tpu.core_type = #tpu.core_type<tc>, window_params = [{transform_indices = @transform_0, window_bounds = array<i64: 1, 8, 32>}, {transform_indices = @transform_1, window_bounds = array<i64: 1, 1, 8>}, {pipeline_mode = #tpu.pipeline_mode<synchronous>, transform_indices = @transform_2, window_bounds = array<i64: 344, 96>}, {transform_indices = @transform_3, window_bounds = array<i64: 1, 1, 32>}]} {
    %c0 = arith.constant 0 : index
    %c0_0 = arith.constant 0 : index
    %c0_1 = arith.constant 0 : index
    %0 = vector.load %arg1[%c0, %c0_0, %c0_1] : memref<1x8x32xf32, #tpu.memory_space<vmem>>, vector<1x8x32xf32>
    %1 = vector.shape_cast %0 : vector<1x8x32xf32> to vector<8x32xf32>
    %c0_2 = arith.constant 0 : index
    %c0_3 = arith.constant 0 : index
    %c0_4 = arith.constant 0 : index
    %2 = vector.load %arg2[%c0_2, %c0_3, %c0_4] : memref<1x1x8xf32, #tpu.memory_space<vmem>>, vector<1x1x8xf32>
    %3 = vector.shape_cast %2 : vector<1x1x8xf32> to vector<1x8xf32>
    %cst = arith.constant 1.000000e+00 : f32
    %4 = vector.broadcast %cst : f32 to vector<1x8xf32>
    %5 = arith.subf %4, %3 : vector<1x8xf32>
    %cst_5 = arith.constant -1.000000e+04 : f32
    %6 = vector.broadcast %cst_5 : f32 to vector<1x8xf32>
    %7 = arith.mulf %5, %6 : vector<1x8xf32>
    %c0_6 = arith.constant 0 : index
    %c0_7 = arith.constant 0 : index
    %8 = vector.load %arg3[%c0_6, %c0_7] : memref<344x96xf32, #tpu.memory_space<vmem>>, vector<1x32xf32>
    %c1 = arith.constant 1 : index
    %c0_8 = arith.constant 0 : index
    %9 = vector.load %arg3[%c1, %c0_8] : memref<344x96xf32, #tpu.memory_space<vmem>>, vector<1x32xf32>
    %cst_9 = arith.constant dense<0.000000e+00> : vector<8xf32>
    %10 = vector.multi_reduction <add>, %1, %cst_9 [1] : vector<8x32xf32> to vector<8xf32>
    %11 = vector.shape_cast %10 : vector<8xf32> to vector<8x1xf32>
    %cst_10 = arith.constant 3.200000e+01 : f32
    %12 = vector.broadcast %cst_10 : f32 to vector<8x1xf32>
    %13 = arith.divf %11, %12 : vector<8x1xf32>
    %14 = vector.broadcast %13 : vector<8x1xf32> to vector<8x32xf32>
    %15 = arith.subf %1, %14 : vector<8x32xf32>
    %16 = vector.broadcast %13 : vector<8x1xf32> to vector<8x32xf32>
    %17 = arith.subf %1, %16 : vector<8x32xf32>
    %18 = arith.mulf %15, %17 : vector<8x32xf32>
    %cst_11 = arith.constant dense<0.000000e+00> : vector<8xf32>
    %19 = vector.multi_reduction <add>, %18, %cst_11 [1] : vector<8x32xf32> to vector<8xf32>
    %20 = vector.shape_cast %19 : vector<8xf32> to vector<8x1xf32>
    %cst_12 = arith.constant 3.200000e+01 : f32
    %21 = vector.broadcast %cst_12 : f32 to vector<8x1xf32>
    %22 = arith.divf %20, %21 : vector<8x1xf32>
    %23 = vector.broadcast %13 : vector<8x1xf32> to vector<8x32xf32>
    %24 = arith.subf %1, %23 : vector<8x32xf32>
    %cst_13 = arith.constant 9.99999996E-13 : f32
    %25 = vector.broadcast %cst_13 : f32 to vector<8x1xf32>
    %26 = arith.addf %22, %25 : vector<8x1xf32>
    %27 = math.rsqrt %26 : vector<8x1xf32>
    %28 = vector.broadcast %27 : vector<8x1xf32> to vector<8x32xf32>
    %29 = arith.mulf %24, %28 : vector<8x32xf32>
    %30 = vector.broadcast %8 : vector<1x32xf32> to vector<8x32xf32>
    %31 = arith.mulf %29, %30 : vector<8x32xf32>
    %32 = vector.broadcast %9 : vector<1x32xf32> to vector<8x32xf32>
    %33 = arith.addf %31, %32 : vector<8x32xf32>
    %c8 = arith.constant 8 : index
    %c0_14 = arith.constant 0 : index
    %34 = vector.load %arg3[%c8, %c0_14] : memref<344x96xf32, #tpu.memory_space<vmem>>, vector<1x96xf32>
    %c9 = arith.constant 9 : index
    %c0_15 = arith.constant 0 : index
    %35 = vector.load %arg3[%c9, %c0_15] : memref<344x96xf32, #tpu.memory_space<vmem>>, vector<1x32xf32>
    %c10 = arith.constant 10 : index
    %c0_16 = arith.constant 0 : index
    %36 = vector.load %arg3[%c10, %c0_16] : memref<344x96xf32, #tpu.memory_space<vmem>>, vector<1x32xf32>
    %c11 = arith.constant 11 : index
    %c0_17 = arith.constant 0 : index
    %37 = vector.load %arg3[%c11, %c0_17] : memref<344x96xf32, #tpu.memory_space<vmem>>, vector<1x32xf32>
    %c12 = arith.constant 12 : index
    %c0_18 = arith.constant 0 : index
    %38 = vector.load %arg3[%c12, %c0_18] : memref<344x96xf32, #tpu.memory_space<vmem>>, vector<1x64xf32>
    %c13 = arith.constant 13 : index
    %c0_19 = arith.constant 0 : index
    %39 = vector.load %arg3[%c13, %c0_19] : memref<344x96xf32, #tpu.memory_space<vmem>>, vector<1x32xf32>
    %c14 = arith.constant 14 : index
    %c0_20 = arith.constant 0 : index
    %40 = vector.load %arg3[%c14, %c0_20] : memref<344x96xf32, #tpu.memory_space<vmem>>, vector<1x32xf32>
    %c15 = arith.constant 15 : index
    %c0_21 = arith.constant 0 : index
    %41 = vector.load %arg3[%c15, %c0_21] : memref<344x96xf32, #tpu.memory_space<vmem>>, vector<1x32xf32>
    %c16 = arith.constant 16 : index
    %c0_22 = arith.constant 0 : index
    %42 = vector.load %arg3[%c16, %c0_22] : memref<344x96xf32, #tpu.memory_space<vmem>>, vector<32x96xf32>
    %c48 = arith.constant 48 : index
    %c0_23 = arith.constant 0 : index
    %43 = vector.load %arg3[%c48, %c0_23] : memref<344x96xf32, #tpu.memory_space<vmem>>, vector<32x32xf32>
    %c80 = arith.constant 80 : index
    %c0_24 = arith.constant 0 : index
    %44 = vector.load %arg3[%c80, %c0_24] : memref<344x96xf32, #tpu.memory_space<vmem>>, vector<32x64xf32>
    %c112 = arith.constant 112 : index
    %c0_25 = arith.constant 0 : index
    %45 = vector.load %arg3[%c112, %c0_25] : memref<344x96xf32, #tpu.memory_space<vmem>>, vector<64x32xf32>
    %cst_26 = arith.constant dense<0.000000e+00> : vector<8x96xf32>
    %46 = tpu.matmul %33, %42, %cst_26 {dimension_numbers = #tpu.dot_dimension_numbers<[1], [0], [0], [1], [0, 0, 1, 1], [], []>} : vector<8x32xf32>, vector<32x96xf32>, vector<8x96xf32> -> vector<8x96xf32>
    %47 = vector.broadcast %34 : vector<1x96xf32> to vector<8x96xf32>
    %48 = arith.addf %46, %47 : vector<8x96xf32>
    %49 = vector.extract_strided_slice %48 {offsets = [0, 0], sizes = [8, 16], strides = [1, 1]} : vector<8x96xf32> to vector<8x16xf32>
    %50 = vector.extract_strided_slice %48 {offsets = [0, 32], sizes = [8, 16], strides = [1, 1]} : vector<8x96xf32> to vector<8x16xf32>
    %51 = vector.extract_strided_slice %48 {offsets = [0, 64], sizes = [8, 16], strides = [1, 1]} : vector<8x96xf32> to vector<8x16xf32>
    %cst_27 = arith.constant dense<0.000000e+00> : vector<8x8xf32>
    %52 = tpu.matmul %49, %50, %cst_27 {dimension_numbers = #tpu.dot_dimension_numbers<[1], [1], [0], [0], [0, 0, 1, 0], [], []>} : vector<8x16xf32>, vector<8x16xf32>, vector<8x8xf32> -> vector<8x8xf32>
    %53 = vector.broadcast %7 : vector<1x8xf32> to vector<8x8xf32>
    %54 = arith.addf %52, %53 : vector<8x8xf32>
    %55 = math.exp %54 : vector<8x8xf32>
    %cst_28 = arith.constant dense<0.000000e+00> : vector<8xf32>
    %56 = vector.multi_reduction <add>, %55, %cst_28 [1] : vector<8x8xf32> to vector<8xf32>
    %57 = vector.shape_cast %56 : vector<8xf32> to vector<8x1xf32>
    %58 = tpu.reciprocal %57 {approx = true} : vector<8x1xf32> -> vector<8x1xf32>
    %59 = vector.broadcast %58 : vector<8x1xf32> to vector<8x8xf32>
    %60 = arith.mulf %55, %59 : vector<8x8xf32>
    %cst_29 = arith.constant dense<0.000000e+00> : vector<8x16xf32>
    %61 = tpu.matmul %60, %51, %cst_29 {dimension_numbers = #tpu.dot_dimension_numbers<[1], [0], [0], [1], [0, 0, 1, 1], [], []>} : vector<8x8xf32>, vector<8x16xf32>, vector<8x16xf32> -> vector<8x16xf32>
    %62 = vector.extract_strided_slice %48 {offsets = [0, 16], sizes = [8, 16], strides = [1, 1]} : vector<8x96xf32> to vector<8x16xf32>
    %63 = vector.extract_strided_slice %48 {offsets = [0, 48], sizes = [8, 16], strides = [1, 1]} : vector<8x96xf32> to vector<8x16xf32>
    %64 = vector.extract_strided_slice %48 {offsets = [0, 80], sizes = [8, 16], strides = [1, 1]} : vector<8x96xf32> to vector<8x16xf32>
    %cst_30 = arith.constant dense<0.000000e+00> : vector<8x8xf32>
    %65 = tpu.matmul %62, %63, %cst_30 {dimension_numbers = #tpu.dot_dimension_numbers<[1], [1], [0], [0], [0, 0, 1, 0], [], []>} : vector<8x16xf32>, vector<8x16xf32>, vector<8x8xf32> -> vector<8x8xf32>
    %66 = vector.broadcast %7 : vector<1x8xf32> to vector<8x8xf32>
    %67 = arith.addf %65, %66 : vector<8x8xf32>
    %68 = math.exp %67 : vector<8x8xf32>
    %cst_31 = arith.constant dense<0.000000e+00> : vector<8xf32>
    %69 = vector.multi_reduction <add>, %68, %cst_31 [1] : vector<8x8xf32> to vector<8xf32>
    %70 = vector.shape_cast %69 : vector<8xf32> to vector<8x1xf32>
    %71 = tpu.reciprocal %70 {approx = true} : vector<8x1xf32> -> vector<8x1xf32>
    %72 = vector.broadcast %71 : vector<8x1xf32> to vector<8x8xf32>
    %73 = arith.mulf %68, %72 : vector<8x8xf32>
    %cst_32 = arith.constant dense<0.000000e+00> : vector<8x16xf32>
    %74 = tpu.matmul %73, %64, %cst_32 {dimension_numbers = #tpu.dot_dimension_numbers<[1], [0], [0], [1], [0, 0, 1, 1], [], []>} : vector<8x8xf32>, vector<8x16xf32>, vector<8x16xf32> -> vector<8x16xf32>
    %75 = tpu.concatenate %61, %74 in 1 : vector<8x16xf32>, vector<8x16xf32> -> vector<8x32xf32>
    %cst_33 = arith.constant dense<0.000000e+00> : vector<8x32xf32>
    %76 = tpu.matmul %75, %43, %cst_33 {dimension_numbers = #tpu.dot_dimension_numbers<[1], [0], [0], [1], [0, 0, 1, 1], [], []>} : vector<8x32xf32>, vector<32x32xf32>, vector<8x32xf32> -> vector<8x32xf32>
    %77 = vector.broadcast %35 : vector<1x32xf32> to vector<8x32xf32>
    %78 = arith.addf %76, %77 : vector<8x32xf32>
    %79 = arith.addf %33, %78 : vector<8x32xf32>
    %cst_34 = arith.constant dense<0.000000e+00> : vector<8xf32>
    %80 = vector.multi_reduction <add>, %79, %cst_34 [1] : vector<8x32xf32> to vector<8xf32>
    %81 = vector.shape_cast %80 : vector<8xf32> to vector<8x1xf32>
    %cst_35 = arith.constant 3.200000e+01 : f32
    %82 = vector.broadcast %cst_35 : f32 to vector<8x1xf32>
    %83 = arith.divf %81, %82 : vector<8x1xf32>
    %84 = vector.broadcast %83 : vector<8x1xf32> to vector<8x32xf32>
    %85 = arith.subf %79, %84 : vector<8x32xf32>
    %86 = vector.broadcast %83 : vector<8x1xf32> to vector<8x32xf32>
    %87 = arith.subf %79, %86 : vector<8x32xf32>
    %88 = arith.mulf %85, %87 : vector<8x32xf32>
    %cst_36 = arith.constant dense<0.000000e+00> : vector<8xf32>
    %89 = vector.multi_reduction <add>, %88, %cst_36 [1] : vector<8x32xf32> to vector<8xf32>
    %90 = vector.shape_cast %89 : vector<8xf32> to vector<8x1xf32>
    %cst_37 = arith.constant 3.200000e+01 : f32
    %91 = vector.broadcast %cst_37 : f32 to vector<8x1xf32>
    %92 = arith.divf %90, %91 : vector<8x1xf32>
    %93 = vector.broadcast %83 : vector<8x1xf32> to vector<8x32xf32>
    %94 = arith.subf %79, %93 : vector<8x32xf32>
    %cst_38 = arith.constant 9.99999996E-13 : f32
    %95 = vector.broadcast %cst_38 : f32 to vector<8x1xf32>
    %96 = arith.addf %92, %95 : vector<8x1xf32>
    %97 = math.rsqrt %96 : vector<8x1xf32>
    %98 = vector.broadcast %97 : vector<8x1xf32> to vector<8x32xf32>
    %99 = arith.mulf %94, %98 : vector<8x32xf32>
    %100 = vector.broadcast %36 : vector<1x32xf32> to vector<8x32xf32>
    %101 = arith.mulf %99, %100 : vector<8x32xf32>
    %102 = vector.broadcast %37 : vector<1x32xf32> to vector<8x32xf32>
    %103 = arith.addf %101, %102 : vector<8x32xf32>
    %cst_39 = arith.constant dense<0.000000e+00> : vector<8x64xf32>
    %104 = tpu.matmul %103, %44, %cst_39 {dimension_numbers = #tpu.dot_dimension_numbers<[1], [0], [0], [1], [0, 0, 1, 1], [], []>} : vector<8x32xf32>, vector<32x64xf32>, vector<8x64xf32> -> vector<8x64xf32>
    %105 = vector.broadcast %38 : vector<1x64xf32> to vector<8x64xf32>
    %106 = arith.addf %104, %105 : vector<8x64xf32>
    %cst_40 = arith.constant 5.000000e-01 : f32
    %107 = vector.broadcast %cst_40 : f32 to vector<8x64xf32>
    %108 = arith.mulf %107, %106 : vector<8x64xf32>
    %cst_41 = arith.constant 4.471500e-02 : f32
    %109 = vector.broadcast %cst_41 : f32 to vector<8x64xf32>
    %110 = arith.mulf %109, %106 : vector<8x64xf32>
    %111 = arith.mulf %110, %106 : vector<8x64xf32>
    %112 = arith.mulf %111, %106 : vector<8x64xf32>
    %113 = arith.addf %106, %112 : vector<8x64xf32>
    %cst_42 = arith.constant 0.797884583 : f32
    %114 = vector.broadcast %cst_42 : f32 to vector<8x64xf32>
    %115 = arith.mulf %114, %113 : vector<8x64xf32>
    %116 = math.tanh %115 : vector<8x64xf32>
    %cst_43 = arith.constant 1.000000e+00 : f32
    %117 = vector.broadcast %cst_43 : f32 to vector<8x64xf32>
    %118 = arith.addf %117, %116 : vector<8x64xf32>
    %119 = arith.mulf %108, %118 : vector<8x64xf32>
    %cst_44 = arith.constant dense<0.000000e+00> : vector<8x32xf32>
    %120 = tpu.matmul %119, %45, %cst_44 {dimension_numbers = #tpu.dot_dimension_numbers<[1], [0], [0], [1], [0, 0, 1, 1], [], []>} : vector<8x64xf32>, vector<64x32xf32>, vector<8x32xf32> -> vector<8x32xf32>
    %121 = vector.broadcast %39 : vector<1x32xf32> to vector<8x32xf32>
    %122 = arith.addf %120, %121 : vector<8x32xf32>
    %123 = arith.addf %103, %122 : vector<8x32xf32>
    %cst_45 = arith.constant dense<0.000000e+00> : vector<8xf32>
    %124 = vector.multi_reduction <add>, %123, %cst_45 [1] : vector<8x32xf32> to vector<8xf32>
    %125 = vector.shape_cast %124 : vector<8xf32> to vector<8x1xf32>
    %cst_46 = arith.constant 3.200000e+01 : f32
    %126 = vector.broadcast %cst_46 : f32 to vector<8x1xf32>
    %127 = arith.divf %125, %126 : vector<8x1xf32>
    %128 = vector.broadcast %127 : vector<8x1xf32> to vector<8x32xf32>
    %129 = arith.subf %123, %128 : vector<8x32xf32>
    %130 = vector.broadcast %127 : vector<8x1xf32> to vector<8x32xf32>
    %131 = arith.subf %123, %130 : vector<8x32xf32>
    %132 = arith.mulf %129, %131 : vector<8x32xf32>
    %cst_47 = arith.constant dense<0.000000e+00> : vector<8xf32>
    %133 = vector.multi_reduction <add>, %132, %cst_47 [1] : vector<8x32xf32> to vector<8xf32>
    %134 = vector.shape_cast %133 : vector<8xf32> to vector<8x1xf32>
    %cst_48 = arith.constant 3.200000e+01 : f32
    %135 = vector.broadcast %cst_48 : f32 to vector<8x1xf32>
    %136 = arith.divf %134, %135 : vector<8x1xf32>
    %137 = vector.broadcast %127 : vector<8x1xf32> to vector<8x32xf32>
    %138 = arith.subf %123, %137 : vector<8x32xf32>
    %cst_49 = arith.constant 9.99999996E-13 : f32
    %139 = vector.broadcast %cst_49 : f32 to vector<8x1xf32>
    %140 = arith.addf %136, %139 : vector<8x1xf32>
    %141 = math.rsqrt %140 : vector<8x1xf32>
    %142 = vector.broadcast %141 : vector<8x1xf32> to vector<8x32xf32>
    %143 = arith.mulf %138, %142 : vector<8x32xf32>
    %144 = vector.broadcast %40 : vector<1x32xf32> to vector<8x32xf32>
    %145 = arith.mulf %143, %144 : vector<8x32xf32>
    %146 = vector.broadcast %41 : vector<1x32xf32> to vector<8x32xf32>
    %147 = arith.addf %145, %146 : vector<8x32xf32>
    %c176 = arith.constant 176 : index
    %c0_50 = arith.constant 0 : index
    %148 = vector.load %arg3[%c176, %c0_50] : memref<344x96xf32, #tpu.memory_space<vmem>>, vector<1x96xf32>
    %c177 = arith.constant 177 : index
    %c0_51 = arith.constant 0 : index
    %149 = vector.load %arg3[%c177, %c0_51] : memref<344x96xf32, #tpu.memory_space<vmem>>, vector<1x32xf32>
    %c178 = arith.constant 178 : index
    %c0_52 = arith.constant 0 : index
    %150 = vector.load %arg3[%c178, %c0_52] : memref<344x96xf32, #tpu.memory_space<vmem>>, vector<1x32xf32>
    %c179 = arith.constant 179 : index
    %c0_53 = arith.constant 0 : index
    %151 = vector.load %arg3[%c179, %c0_53] : memref<344x96xf32, #tpu.memory_space<vmem>>, vector<1x32xf32>
    %c180 = arith.constant 180 : index
    %c0_54 = arith.constant 0 : index
    %152 = vector.load %arg3[%c180, %c0_54] : memref<344x96xf32, #tpu.memory_space<vmem>>, vector<1x64xf32>
    %c181 = arith.constant 181 : index
    %c0_55 = arith.constant 0 : index
    %153 = vector.load %arg3[%c181, %c0_55] : memref<344x96xf32, #tpu.memory_space<vmem>>, vector<1x32xf32>
    %c182 = arith.constant 182 : index
    %c0_56 = arith.constant 0 : index
    %154 = vector.load %arg3[%c182, %c0_56] : memref<344x96xf32, #tpu.memory_space<vmem>>, vector<1x32xf32>
    %c183 = arith.constant 183 : index
    %c0_57 = arith.constant 0 : index
    %155 = vector.load %arg3[%c183, %c0_57] : memref<344x96xf32, #tpu.memory_space<vmem>>, vector<1x32xf32>
    %c184 = arith.constant 184 : index
    %c0_58 = arith.constant 0 : index
    %156 = vector.load %arg3[%c184, %c0_58] : memref<344x96xf32, #tpu.memory_space<vmem>>, vector<32x96xf32>
    %c216 = arith.constant 216 : index
    %c0_59 = arith.constant 0 : index
    %157 = vector.load %arg3[%c216, %c0_59] : memref<344x96xf32, #tpu.memory_space<vmem>>, vector<32x32xf32>
    %c248 = arith.constant 248 : index
    %c0_60 = arith.constant 0 : index
    %158 = vector.load %arg3[%c248, %c0_60] : memref<344x96xf32, #tpu.memory_space<vmem>>, vector<32x64xf32>
    %c280 = arith.constant 280 : index
    %c0_61 = arith.constant 0 : index
    %159 = vector.load %arg3[%c280, %c0_61] : memref<344x96xf32, #tpu.memory_space<vmem>>, vector<64x32xf32>
    %cst_62 = arith.constant dense<0.000000e+00> : vector<8x96xf32>
    %160 = tpu.matmul %147, %156, %cst_62 {dimension_numbers = #tpu.dot_dimension_numbers<[1], [0], [0], [1], [0, 0, 1, 1], [], []>} : vector<8x32xf32>, vector<32x96xf32>, vector<8x96xf32> -> vector<8x96xf32>
    %161 = vector.broadcast %148 : vector<1x96xf32> to vector<8x96xf32>
    %162 = arith.addf %160, %161 : vector<8x96xf32>
    %163 = vector.extract_strided_slice %162 {offsets = [0, 0], sizes = [8, 16], strides = [1, 1]} : vector<8x96xf32> to vector<8x16xf32>
    %164 = vector.extract_strided_slice %162 {offsets = [0, 32], sizes = [8, 16], strides = [1, 1]} : vector<8x96xf32> to vector<8x16xf32>
    %165 = vector.extract_strided_slice %162 {offsets = [0, 64], sizes = [8, 16], strides = [1, 1]} : vector<8x96xf32> to vector<8x16xf32>
    %cst_63 = arith.constant dense<0.000000e+00> : vector<8x8xf32>
    %166 = tpu.matmul %163, %164, %cst_63 {dimension_numbers = #tpu.dot_dimension_numbers<[1], [1], [0], [0], [0, 0, 1, 0], [], []>} : vector<8x16xf32>, vector<8x16xf32>, vector<8x8xf32> -> vector<8x8xf32>
    %167 = vector.broadcast %7 : vector<1x8xf32> to vector<8x8xf32>
    %168 = arith.addf %166, %167 : vector<8x8xf32>
    %169 = math.exp %168 : vector<8x8xf32>
    %cst_64 = arith.constant dense<0.000000e+00> : vector<8xf32>
    %170 = vector.multi_reduction <add>, %169, %cst_64 [1] : vector<8x8xf32> to vector<8xf32>
    %171 = vector.shape_cast %170 : vector<8xf32> to vector<8x1xf32>
    %172 = tpu.reciprocal %171 {approx = true} : vector<8x1xf32> -> vector<8x1xf32>
    %173 = vector.broadcast %172 : vector<8x1xf32> to vector<8x8xf32>
    %174 = arith.mulf %169, %173 : vector<8x8xf32>
    %cst_65 = arith.constant dense<0.000000e+00> : vector<8x16xf32>
    %175 = tpu.matmul %174, %165, %cst_65 {dimension_numbers = #tpu.dot_dimension_numbers<[1], [0], [0], [1], [0, 0, 1, 1], [], []>} : vector<8x8xf32>, vector<8x16xf32>, vector<8x16xf32> -> vector<8x16xf32>
    %176 = vector.extract_strided_slice %162 {offsets = [0, 16], sizes = [8, 16], strides = [1, 1]} : vector<8x96xf32> to vector<8x16xf32>
    %177 = vector.extract_strided_slice %162 {offsets = [0, 48], sizes = [8, 16], strides = [1, 1]} : vector<8x96xf32> to vector<8x16xf32>
    %178 = vector.extract_strided_slice %162 {offsets = [0, 80], sizes = [8, 16], strides = [1, 1]} : vector<8x96xf32> to vector<8x16xf32>
    %cst_66 = arith.constant dense<0.000000e+00> : vector<8x8xf32>
    %179 = tpu.matmul %176, %177, %cst_66 {dimension_numbers = #tpu.dot_dimension_numbers<[1], [1], [0], [0], [0, 0, 1, 0], [], []>} : vector<8x16xf32>, vector<8x16xf32>, vector<8x8xf32> -> vector<8x8xf32>
    %180 = vector.broadcast %7 : vector<1x8xf32> to vector<8x8xf32>
    %181 = arith.addf %179, %180 : vector<8x8xf32>
    %182 = math.exp %181 : vector<8x8xf32>
    %cst_67 = arith.constant dense<0.000000e+00> : vector<8xf32>
    %183 = vector.multi_reduction <add>, %182, %cst_67 [1] : vector<8x8xf32> to vector<8xf32>
    %184 = vector.shape_cast %183 : vector<8xf32> to vector<8x1xf32>
    %185 = tpu.reciprocal %184 {approx = true} : vector<8x1xf32> -> vector<8x1xf32>
    %186 = vector.broadcast %185 : vector<8x1xf32> to vector<8x8xf32>
    %187 = arith.mulf %182, %186 : vector<8x8xf32>
    %cst_68 = arith.constant dense<0.000000e+00> : vector<8x16xf32>
    %188 = tpu.matmul %187, %178, %cst_68 {dimension_numbers = #tpu.dot_dimension_numbers<[1], [0], [0], [1], [0, 0, 1, 1], [], []>} : vector<8x8xf32>, vector<8x16xf32>, vector<8x16xf32> -> vector<8x16xf32>
    %189 = tpu.concatenate %175, %188 in 1 : vector<8x16xf32>, vector<8x16xf32> -> vector<8x32xf32>
    %cst_69 = arith.constant dense<0.000000e+00> : vector<8x32xf32>
    %190 = tpu.matmul %189, %157, %cst_69 {dimension_numbers = #tpu.dot_dimension_numbers<[1], [0], [0], [1], [0, 0, 1, 1], [], []>} : vector<8x32xf32>, vector<32x32xf32>, vector<8x32xf32> -> vector<8x32xf32>
    %191 = vector.broadcast %149 : vector<1x32xf32> to vector<8x32xf32>
    %192 = arith.addf %190, %191 : vector<8x32xf32>
    %193 = arith.addf %147, %192 : vector<8x32xf32>
    %cst_70 = arith.constant dense<0.000000e+00> : vector<8xf32>
    %194 = vector.multi_reduction <add>, %193, %cst_70 [1] : vector<8x32xf32> to vector<8xf32>
    %195 = vector.shape_cast %194 : vector<8xf32> to vector<8x1xf32>
    %cst_71 = arith.constant 3.200000e+01 : f32
    %196 = vector.broadcast %cst_71 : f32 to vector<8x1xf32>
    %197 = arith.divf %195, %196 : vector<8x1xf32>
    %198 = vector.broadcast %197 : vector<8x1xf32> to vector<8x32xf32>
    %199 = arith.subf %193, %198 : vector<8x32xf32>
    %200 = vector.broadcast %197 : vector<8x1xf32> to vector<8x32xf32>
    %201 = arith.subf %193, %200 : vector<8x32xf32>
    %202 = arith.mulf %199, %201 : vector<8x32xf32>
    %cst_72 = arith.constant dense<0.000000e+00> : vector<8xf32>
    %203 = vector.multi_reduction <add>, %202, %cst_72 [1] : vector<8x32xf32> to vector<8xf32>
    %204 = vector.shape_cast %203 : vector<8xf32> to vector<8x1xf32>
    %cst_73 = arith.constant 3.200000e+01 : f32
    %205 = vector.broadcast %cst_73 : f32 to vector<8x1xf32>
    %206 = arith.divf %204, %205 : vector<8x1xf32>
    %207 = vector.broadcast %197 : vector<8x1xf32> to vector<8x32xf32>
    %208 = arith.subf %193, %207 : vector<8x32xf32>
    %cst_74 = arith.constant 9.99999996E-13 : f32
    %209 = vector.broadcast %cst_74 : f32 to vector<8x1xf32>
    %210 = arith.addf %206, %209 : vector<8x1xf32>
    %211 = math.rsqrt %210 : vector<8x1xf32>
    %212 = vector.broadcast %211 : vector<8x1xf32> to vector<8x32xf32>
    %213 = arith.mulf %208, %212 : vector<8x32xf32>
    %214 = vector.broadcast %150 : vector<1x32xf32> to vector<8x32xf32>
    %215 = arith.mulf %213, %214 : vector<8x32xf32>
    %216 = vector.broadcast %151 : vector<1x32xf32> to vector<8x32xf32>
    %217 = arith.addf %215, %216 : vector<8x32xf32>
    %cst_75 = arith.constant dense<0.000000e+00> : vector<8x64xf32>
    %218 = tpu.matmul %217, %158, %cst_75 {dimension_numbers = #tpu.dot_dimension_numbers<[1], [0], [0], [1], [0, 0, 1, 1], [], []>} : vector<8x32xf32>, vector<32x64xf32>, vector<8x64xf32> -> vector<8x64xf32>
    %219 = vector.broadcast %152 : vector<1x64xf32> to vector<8x64xf32>
    %220 = arith.addf %218, %219 : vector<8x64xf32>
    %cst_76 = arith.constant 5.000000e-01 : f32
    %221 = vector.broadcast %cst_76 : f32 to vector<8x64xf32>
    %222 = arith.mulf %221, %220 : vector<8x64xf32>
    %cst_77 = arith.constant 4.471500e-02 : f32
    %223 = vector.broadcast %cst_77 : f32 to vector<8x64xf32>
    %224 = arith.mulf %223, %220 : vector<8x64xf32>
    %225 = arith.mulf %224, %220 : vector<8x64xf32>
    %226 = arith.mulf %225, %220 : vector<8x64xf32>
    %227 = arith.addf %220, %226 : vector<8x64xf32>
    %cst_78 = arith.constant 0.797884583 : f32
    %228 = vector.broadcast %cst_78 : f32 to vector<8x64xf32>
    %229 = arith.mulf %228, %227 : vector<8x64xf32>
    %230 = math.tanh %229 : vector<8x64xf32>
    %cst_79 = arith.constant 1.000000e+00 : f32
    %231 = vector.broadcast %cst_79 : f32 to vector<8x64xf32>
    %232 = arith.addf %231, %230 : vector<8x64xf32>
    %233 = arith.mulf %222, %232 : vector<8x64xf32>
    %cst_80 = arith.constant dense<0.000000e+00> : vector<8x32xf32>
    %234 = tpu.matmul %233, %159, %cst_80 {dimension_numbers = #tpu.dot_dimension_numbers<[1], [0], [0], [1], [0, 0, 1, 1], [], []>} : vector<8x64xf32>, vector<64x32xf32>, vector<8x32xf32> -> vector<8x32xf32>
    %235 = vector.broadcast %153 : vector<1x32xf32> to vector<8x32xf32>
    %236 = arith.addf %234, %235 : vector<8x32xf32>
    %237 = arith.addf %217, %236 : vector<8x32xf32>
    %cst_81 = arith.constant dense<0.000000e+00> : vector<8xf32>
    %238 = vector.multi_reduction <add>, %237, %cst_81 [1] : vector<8x32xf32> to vector<8xf32>
    %239 = vector.shape_cast %238 : vector<8xf32> to vector<8x1xf32>
    %cst_82 = arith.constant 3.200000e+01 : f32
    %240 = vector.broadcast %cst_82 : f32 to vector<8x1xf32>
    %241 = arith.divf %239, %240 : vector<8x1xf32>
    %242 = vector.broadcast %241 : vector<8x1xf32> to vector<8x32xf32>
    %243 = arith.subf %237, %242 : vector<8x32xf32>
    %244 = vector.broadcast %241 : vector<8x1xf32> to vector<8x32xf32>
    %245 = arith.subf %237, %244 : vector<8x32xf32>
    %246 = arith.mulf %243, %245 : vector<8x32xf32>
    %cst_83 = arith.constant dense<0.000000e+00> : vector<8xf32>
    %247 = vector.multi_reduction <add>, %246, %cst_83 [1] : vector<8x32xf32> to vector<8xf32>
    %248 = vector.shape_cast %247 : vector<8xf32> to vector<8x1xf32>
    %cst_84 = arith.constant 3.200000e+01 : f32
    %249 = vector.broadcast %cst_84 : f32 to vector<8x1xf32>
    %250 = arith.divf %248, %249 : vector<8x1xf32>
    %251 = vector.broadcast %241 : vector<8x1xf32> to vector<8x32xf32>
    %252 = arith.subf %237, %251 : vector<8x32xf32>
    %cst_85 = arith.constant 9.99999996E-13 : f32
    %253 = vector.broadcast %cst_85 : f32 to vector<8x1xf32>
    %254 = arith.addf %250, %253 : vector<8x1xf32>
    %255 = math.rsqrt %254 : vector<8x1xf32>
    %256 = vector.broadcast %255 : vector<8x1xf32> to vector<8x32xf32>
    %257 = arith.mulf %252, %256 : vector<8x32xf32>
    %258 = vector.broadcast %154 : vector<1x32xf32> to vector<8x32xf32>
    %259 = arith.mulf %257, %258 : vector<8x32xf32>
    %260 = vector.broadcast %155 : vector<1x32xf32> to vector<8x32xf32>
    %261 = arith.addf %259, %260 : vector<8x32xf32>
    %cst_86 = arith.constant dense<0.000000e+00> : vector<32xf32>
    %262 = vector.multi_reduction <add>, %147, %cst_86 [0] : vector<8x32xf32> to vector<32xf32>
    %263 = vector.shape_cast %262 : vector<32xf32> to vector<1x32xf32>
    %cst_87 = arith.constant 8.000000e+00 : f32
    %264 = vector.broadcast %cst_87 : f32 to vector<1x32xf32>
    %265 = arith.divf %263, %264 : vector<1x32xf32>
    %cst_88 = arith.constant dense<0.000000e+00> : vector<32xf32>
    %266 = vector.multi_reduction <add>, %261, %cst_88 [0] : vector<8x32xf32> to vector<32xf32>
    %267 = vector.shape_cast %266 : vector<32xf32> to vector<1x32xf32>
    %cst_89 = arith.constant 8.000000e+00 : f32
    %268 = vector.broadcast %cst_89 : f32 to vector<1x32xf32>
    %269 = arith.divf %267, %268 : vector<1x32xf32>
    %270 = arith.addf %265, %269 : vector<1x32xf32>
    %cst_90 = arith.constant 5.000000e-01 : f32
    %271 = vector.broadcast %cst_90 : f32 to vector<1x32xf32>
    %272 = arith.mulf %271, %270 : vector<1x32xf32>
    %273 = vector.shape_cast %272 : vector<1x32xf32> to vector<1x1x32xf32>
    %c0_91 = arith.constant 0 : index
    %c0_92 = arith.constant 0 : index
    %c0_93 = arith.constant 0 : index
    %274 = vector.load %arg4[%c0_91, %c0_92, %c0_93] : memref<1x1x32xf32, #tpu.memory_space<vmem>>, vector<1x1x32xf32>
    tpu.vector_store %arg4[%c0_91, %c0_92, %c0_93], %273 {strides = array<i32>} : memref<1x1x32xf32, #tpu.memory_space<vmem>>, vector<1x1x32xf32>,
    return
  }
  func.func @transform_0(%arg0: i32) -> (i32, i32, i32) {
    %c0_i32 = arith.constant 0 : i32
    %c0_i32_0 = arith.constant 0 : i32
    %c0_i32_1 = arith.constant 0 : i32
    return %arg0, %c0_i32, %c0_i32_0 : i32, i32, i32
  }
  func.func @transform_1(%arg0: i32) -> (i32, i32, i32) {
    %c0_i32 = arith.constant 0 : i32
    %c0_i32_0 = arith.constant 0 : i32
    %c0_i32_1 = arith.constant 0 : i32
    return %arg0, %c0_i32, %c0_i32_0 : i32, i32, i32
  }
  func.func @transform_2(%arg0: i32) -> (i32, i32) {
    %c0_i32 = arith.constant 0 : i32
    %c0_i32_0 = arith.constant 0 : i32
    %c0_i32_1 = arith.constant 0 : i32
    return %c0_i32, %c0_i32_0 : i32, i32
  }
  func.func @transform_3(%arg0: i32) -> (i32, i32, i32) {
    %c0_i32 = arith.constant 0 : i32
    %c0_i32_0 = arith.constant 0 : i32
    %c0_i32_1 = arith.constant 0 : i32
    return %arg0, %c0_i32, %c0_i32_0 : i32, i32, i32
  }
}

</mosaic_0001>

<bundles_post_ra>
// kernel: cosent_forward.1
= control target key start
LH: loop header
LB: loop body
LE: loop exit
PB: predicated region body
PF: predicated region fallthrough
CT: control target
= control target key end

     0   :  { %8 = vsyncpa [#allocation3], 0  ;;  %s2647_s0 = inlined_call_operand.vmem [shape: f32[2,8,32], index: 0, kind: input, shape index: {}]   ;;  %s2648_s1 = inlined_call_operand.vmem [shape: f32[2,1,8], index: 1, kind: input, shape index: {}]   ;;  %s2649_s2 = inlined_call_operand.vmem [shape: f32[344,96], index: 2, kind: input, shape index: {}]   ;;  %s2650_s3 = inlined_call_operand.hbm [shape: f32[2,1,32], index: 3, kind: output, shape index: {}]  }
   0x1   :  { %10 = vsyncpa [#allocation3 + $0x1], 0  ;;  %s2241_s12 = smov 0   ;;  %s2243_s13 = smov 0  }
   0x2   :  { %s2245_s14 = smov 0   ;;  %s2247_s15 = smov 0  }
   0x3 LB: > { %s2262_s16 = sadd.s32 4294967295, %s2209_s15   ;;  %s1755_s17 = sadd.s32 4294967294, %s2209_s15   ;;  %s2209_s15 = sphi %s2247_s15, %s2656_s15   ;;  %s2205_s14 = sphi %s2245_s14, %s2655_s14   ;;  %s2201_s13 = sphi %s2243_s13, %s2654_s13   ;;  %s2197_s12 = sphi %s2241_s12, %s2653_s12  }
   0x4   : > { %s2266_s18 = sadd.s32 1, %s2209_s15   ;;  %s96_s19 = sadd.s32 1, %s2205_s14 }
   0x5   : > { %s93_s20 = ssub.s32 %s2209_s15, %s2266_s18  ;;  %p106_p0 = scmp.ne.s32.totalorder %s2205_s14, %s2201_s13 }
   0x6   : > { %p94_p1 = scmp.eq.s32.totalorder %s93_s20, 0  ;;  %p107_p2 = scmp.eq.s32.totalorder %s2262_s16, 1 }
   0x7   : > { %p112_p3 = scmp.ne.s32.totalorder %s2201_s13, %s2197_s12  ;;  %p113_p4 = scmp.eq.s32.totalorder %s1755_s17, 1 }
   0x8   : > { %s2277_s21 = scalar_select %p94_p1, %s2205_s14, %s96_s19  }
   0x9   : > { %p2279_p5 = por %p107_p2, %p106_p0  ;;  %p2283_p6 = por %p113_p4, %p112_p3 }
   0xa   : > { %p1758_p7 = scmp.ge.s32.totalorder %s2209_s15, 1  ;;  %p147_p8 = scmp.lt.s32.totalorder %s2209_s15, 3 }
   0xc   : > { %p148_p9 = pnand %p1758_p7, %p147_p8 }
   0xd   : > { %p172_p10 = scmp.lt.s32.totalorder (!%p148_p9), %s2262_s16, 1  ;;  %vm185_vm0 = vcmask (!%p148_p9), 261120   ;;  %v218_v7 = vld [vmem:[%s2649_s2 + $0x10] sm:$0xff] (!%p148_p9)  ;;  %v219_v8 = vld [vmem:[%s2649_s2 + $0x18] sm:$0xff] (!%p148_p9)  ;;  %v220_v9 = vld [vmem:[%s2649_s2 + $0x20] sm:$0xff] (!%p148_p9)  ;;  %v2211_v10 = vmov (!%p148_p9), 0.0|0.0   ;;  %v316_v31 = vlaneseq (!%p148_p9) }
   0xe   : > { %151 = sbr.rel (%p148_p9) target bundleno = 5060 (0x13c4), region = 32  ;;  %2009 = vmatprep.subr.bf16.mxu1 (!%p148_p9), %v2211_v10  ;;  %v2010_v11 = vpack.c.bf16 (!%p148_p9), %v219_v8, %v218_v7  ;;  %v221_v12 = vld [vmem:[%s2649_s2 + $0x28] sm:$0xff] (!%p148_p9)  ;;  %vm2212_vm1 = vmmov (!%p148_p9), 0   ;;  %v2213_v13 = vmov (!%p148_p9), 0.0   ;;  %v1760_v19 = vld [vmem:[%s2649_s2] ss:$0 sm:$0xff] (!%p148_p9) }
   0xf   : > { %1873 = vmatprep.mubr.msk.f32.mxu1 (!%p148_p9), %vm2212_vm1, %v2213_v13  ;;  %1886 = vmatprep.subr.mxu0 (!%p148_p9), %v2213_v13  ;;  %v2013_v14 = vpack.c.bf16 (!%p148_p9), %v221_v12, %v220_v9  ;;  %v1761_v21 = vld [vmem:[%s2649_s2 + $0x1] ss:$0 sm:$0xff] (!%p148_p9)  ;;  %v1762_v24 = vld [vmem:[%s2649_s2 + $0x8] ss:$0 sm:$0xff] (!%p148_p9)  ;;  %s2214_s26 = smov (!%p148_p9), 112   ;;  %s2215_s27 = smov (!%p148_p9), 96  }
  0x10   : > { %1888 = vmatprep.mubr.msk.f32.mxu0 (!%p148_p9), %vm2212_vm1, %v2213_v13  ;;  %2011 = vmatpush3.bf16.msra.mxu1 (!%p148_p9), %v2010_v11  ;;  %vm324_vm2 = vcmask (!%p148_p9), 130048   ;;  %v317_v34 = vshrl.u32 (!%p148_p9), %v316_v31, 7  ;;  %vm401_vm3 = vcmask (!%p148_p9), 64512   ;;  %s2218_s5 = smov (!%p148_p9), 48   ;;  %v222_v58 = vld [vmem:[%s2649_s2 + $0x30] sm:$0xff] (!%p148_p9)  ;;  %v223_v59 = vld [vmem:[%s2649_s2 + $0x38] sm:$0xff] (!%p148_p9) }
  0x11   : > { %2012 = vmatprep.subr.bf16.mxu1 (!%p148_p9), %v2211_v10  ;;  %v224_v60 = vld [vmem:[%s2649_s2 + $0x40] sm:$0xff] (!%p148_p9)  ;;  %v2016_v61 = vpack.c.bf16 (!%p148_p9), %v223_v59, %v222_v58  ;;  %v225_v62 = vld [vmem:[%s2649_s2 + $0x48] sm:$0xff] (!%p148_p9)  ;;  %s2219_s20 = smov (!%p148_p9), 16   ;;  %vm840_vm4 = vcmask (!%p148_p9), 523264   ;;  %s1798_s7 = sshll.u32 (!%p148_p9), %s2262_s16, 4  ;;  %vm1676_vm5 = vcmask (!%p148_p9), 253952  }
  0x12   : > { %v318_v36 = vsub.s32 (!%p148_p9), 0, %v317_v34  ;;  %v2019_v63 = vpack.c.bf16 (!%p148_p9), %v225_v62, %v224_v60  ;;  %v1773_v31 = vld [vmem:[%s2649_s2 + $0xb] ss:$0 sm:$0xff] (!%p148_p9)  ;;  %v230_v34 = vld [vmem:[%s2649_s2 + $0x70] sm:$0xff] (!%p148_p9)  ;;  %v1776_v60 = vld [vmem:[%s2649_s2 + $0xd] ss:$0 sm:$0xff] (!%p148_p9)  ;;  %s2605_s17 = scalar_lea.hbm (!%p148_p9), %s2650_s3, %s1798_s7 }
  0x14   : > { %2014 = vmatpush3.bf16.msra.mxu1 (!%p148_p9), %v2013_v14 }
  0x15   : > { %s2291_s24 = scalar_select %p172_p10, %s2262_s16, 1  ;;  %1876 = vmatprep.subr.mxu1 %v2213_v13 }
  0x16   : > { %s2220_s16 = smov [#allocation2]  }
  0x17   : > { %s1759_s25 = sshll.u32 %s2291_s24, 3  ;;  %s178_s4 = scalar_lea.vmem %s2648_s1, %s2291_s24 }
  0x18   : > { %s175_s28 = scalar_lea.vmem %s2647_s0, %s1759_s25  ;;  %v180_v32 = vld [vmem:[%s178_s4] sm:$0x1]  ;;  %s2217_s24 = smov 64  }
  0x19   : > { %v179_v0 = vld [vmem:[%s175_s28] sm:$0xff]  ;;  %s2216_s28 = smov 80   ;;  %v181_v33 = vsub.f32 1.0, %v180_v32 }
  0x1a   : > { %v186_v1 = vsel %vm185_vm0, %v179_v0, 0.0 }
  0x1b   : > { %187 = vadd.xlane.f32.xlu0 %v186_v1  ;;  %v182_v35 = vmul.f32 -10000.0, %v181_v33 }
  0x1d   : > { %v2351_v37 = vrot.slane %v182_v35, %v318_v36  ;;  %v231_v35 = vld [vmem:[%s2649_s2 + $0x78] sm:$0xff] }
  0x1e   : > { %v2028_v36 = vpack.c.bf16 %v231_v35, %v230_v34 }
  0xa8   : > { %v188_v2 = vpop.xlane.xlu0 %187 }
  0xa9   : > { %v190_v3 = vmul.f32 0.03125, %v188_v2 }
  0xab   : > { %v191_v4 = vsub.f32 %v179_v0, %v190_v3 }
  0xad   : > { %v192_v5 = vmul.f32 %v191_v4, %v191_v4 }
  0xaf   : > { %v193_v6 = vsel %vm185_vm0, %v192_v5, 0.0 }
  0xb0   : > { %194 = vadd.xlane.f32.xlu0 %v193_v6  ;;  %v1770_v6 = vld [vmem:[%s2649_s2 + $0x9] ss:$0 sm:$0xff] }
 0x13d   : > { %v195_v15 = vpop.xlane.xlu0 %194 }
 0x13e   : > { %v196_v16 = vmul.f32 0.03125, %v195_v15 }
 0x140   : > { %v197_v17 = vadd.f32 1e-12, %v196_v16 }
 0x142   : > { %2117 = vrsqrt.f32 %v197_v17 }
 0x14c   : > { %v2118_v18 = vpop.eup %2117 }
 0x14d   : > { %v199_v20 = vmul.f32 %v2118_v18, %v191_v4 }
 0x14f   : > { %v204_v22 = vmul.f32 %v1760_v19, %v199_v20  ;;  %v226_v19 = vld [vmem:[%s2649_s2 + $0x50] sm:$0xff]  ;;  %v227_v20 = vld [vmem:[%s2649_s2 + $0x58] sm:$0xff] }
 0x151   : > { %v2325_v23 = vadd.f32 %v1761_v21, %v204_v22  ;;  %v2022_v21 = vpack.c.bf16 %v227_v20, %v226_v19  ;;  %v228_v22 = vld [vmem:[%s2649_s2 + $0x60] sm:$0xff]  ;;  %v1778_v19 = vld [vmem:[%s2649_s2 + $0xe] ss:$0 sm:$0xff] }
 0x153   : > { %1874 = vmatmul.mubr.msk.f32.vlgmr.msra.gmra.mrb[0].mxu1 %vm185_vm0, %v2325_v23 }
 0x154   : > { %1878 = vmatprep.mubr.msk.f32.mxu1 %vm2212_vm1, %v2213_v13 }
 0x226   : > { %v311_v25 = vpop.f32.mrb[0].mxu1 }
 0x227   : > { %v312_v26 = vadd.f32 %v1762_v24, %v311_v25  ;;  %v1875_v27 = vpop.f32.mrb[1].mxu1 }
 0x229   : > { %483 = vrot.lane.b32.xlu0 %v312_v26, %s2214_s26  ;;  %322 = vrot.lane.b32.xlu1 %v312_v26, %s2215_s27 }
 0x22d   : > { %485 = vrot.lane.b32.xlu1 %v312_v26, %s2216_s28 }
 0x29b   : > { %v323_v28 = vpop.permute.xlu1 %322  ;;  %v484_v30 = vpop.permute.xlu0 %483 }
 0x29c   : > { %1877 = vmatpush3.xpose.msk.msra.mxu1 %vm324_vm2, %v323_v28 }
 0x29d   : > { %1881 = vmatprep.subr.mxu1 %v2213_v13 }
 0x29f   : > { %1879 = vmatmul.mubr.msk.f32.vlgmr.msra.gmra.mrb[2].mxu1 %vm324_vm2, %v312_v26  ;;  %v486_v29 = vpop.permute.xlu1 %485 }
 0x2a0   : > { %1887 = vmatpush3.xpose.msk.msra.mxu0 %vm324_vm2, %v486_v29  ;;  %1883 = vmatprep.mubr.msk.f32.mxu1 %vm2212_vm1, %v2213_v13  ;;  %v1772_v29 = vld [vmem:[%s2649_s2 + $0xa] ss:$0 sm:$0xff] }
 0x2a1   : > { %2015 = vmatprep.subr.bf16.mxu0 %v2211_v10 }
 0x2a3   : > { %1889 = vmatmul.mubr.msk.f32.vlgmr.msra.gmra.mrb[0].mxu0 %vm324_vm2, %v484_v30 }
 0x2a4   : > { %1904 = vmatprep.mubr.msk.f32.mxu0 %vm2212_vm1, %v2213_v13  ;;  %2017 = vmatpush3.bf16.msra.mxu0 %v2016_v61 }
 0x2a5   : > { %2018 = vmatprep.subr.bf16.mxu0 %v2211_v10 }
 0x2a8   : > { %2020 = vmatpush3.bf16.msra.mxu0 %v2019_v63 }
 0x2a9   : > { %2027 = vmatprep.subr.bf16.mxu0 %v2211_v10 }
 0x372   : > { %v395_v38 = vpop.f32.mrb[2].mxu1 }
 0x373   : > { %v396_v39 = vadd.f32 %v395_v38, %v2351_v37  ;;  %v1880_v40 = vpop.f32.mrb[3].mxu1  ;;  %v232_v38 = vld [vmem:[%s2649_s2 + $0x80] sm:$0xff] }
 0x375   : > { %v399_v41 = vmul.f32 1.442695, %v396_v39  ;;  %v233_v39 = vld [vmem:[%s2649_s2 + $0x88] sm:$0xff] }
 0x376   : > { %v557_v42 = vpop.f32.mrb[0].mxu0  ;;  %v2031_v40 = vpack.c.bf16 %v233_v39, %v232_v38 }
 0x377   : > { %2119 = vpow2.f32 %v399_v41  ;;  %v558_v43 = vadd.f32 %v557_v42, %v2351_v37  ;;  %v1890_v44 = vpop.f32.mrb[1].mxu0  ;;  %v234_v41 = vld [vmem:[%s2649_s2 + $0x90] sm:$0xff]  ;;  %v235_v42 = vld [vmem:[%s2649_s2 + $0x98] sm:$0xff] }
 0x378   : > { %v236_v44 = vld [vmem:[%s2649_s2 + $0xa0] sm:$0xff] }
 0x379   : > { %v561_v45 = vmul.f32 1.442695, %v558_v43  ;;  %v2034_v43 = vpack.c.bf16 %v235_v42, %v234_v41 }
 0x37b   : > { %2121 = vpow2.f32 %v561_v45  ;;  %v237_v45 = vld [vmem:[%s2649_s2 + $0xa8] sm:$0xff] }
 0x381   : > { %v2120_v46 = vpop.eup %2119 }
 0x382   : > { %v402_v47 = vsel %vm401_vm3, %v2120_v46, 0.0 }
 0x383   : > { %403 = vadd.xlane.f32.xlu1 %v402_v47  ;;  %v1774_v47 = vld [vmem:[%s2649_s2 + $0xc] ss:$0 sm:$0xff] }
 0x385   : > { %v2122_v48 = vpop.eup %2121 }
 0x386   : > { %v563_v49 = vsel %vm401_vm3, %v2122_v48, 0.0 }
 0x387   : > { %564 = vadd.xlane.f32.xlu0 %v563_v49 }
 0x394   : > { %407 = vrot.lane.b32.xlu1 %v312_v26, %s2217_s24 }
 0x39d   : > { %568 = vrot.lane.b32.xlu0 %v312_v26, %s2218_s5 }
 0x410   : > { %v404_v50 = vpop.xlane.xlu1 %403 }
 0x411   : > { %2123 = vrcp.f32 %v404_v50 }
 0x414   : > { %v565_v51 = vpop.xlane.xlu0 %564  ;;  %v408_v52 = vpop.permute.xlu1 %407 }
 0x415   : > { %2125 = vrcp.f32 %v565_v51  ;;  %1882 = vmatpush3.msra.mxu1 %v408_v52 }
 0x416   : > { %1891 = vmatprep.subr.mxu1 %v2213_v13 }
 0x418   : > { %v569_v55 = vpop.permute.xlu0 %568 }
 0x41b   : > { %v2124_v53 = vpop.eup %2123 }
 0x41c   : > { %v406_v54 = vmul.f32 %v2124_v53, %v2120_v46  ;;  %v2037_v46 = vpack.c.bf16 %v237_v45, %v236_v44 }
 0x41e   : > { %1884 = vmatmul.mubr.msk.f32.vlgmr.msra.gmra.mrb[4].mxu1 %vm401_vm3, %v406_v54 }
 0x41f   : > { %v2126_v56 = vpop.eup %2125  ;;  %1892 = vmatpush3.msra.mxu1 %v569_v55  ;;  %1893 = vmatprep.mubr.msk.f32.mxu1 %vm2212_vm1, %v2213_v13 }
 0x420   : > { %v567_v57 = vmul.f32 %v2126_v56, %v2122_v48  ;;  %2021 = vmatprep.subr.bf16.mxu1 %v2211_v10 }
 0x422   : > { %1894 = vmatmul.mubr.msk.f32.vlgmr.msra.gmra.mrb[6].mxu1 %vm401_vm3, %v567_v57 }
 0x423   : > { %1915 = vmatprep.mubr.msk.f32.mxu1 %vm2212_vm1, %v2213_v13  ;;  %2023 = vmatpush3.bf16.msra.mxu1 %v2022_v21  ;;  %v1779_v21 = vld [vmem:[%s2649_s2 + $0xf] ss:$0 sm:$0xff] }
 0x424   : > { %2024 = vmatprep.subr.bf16.mxu1 %v2211_v10 }
 0x4f1   : > { %v479_v0 = vpop.f32.mrb[4].mxu1 }
 0x4f2   : > { %v1885_v1 = vpop.f32.mrb[5].mxu1 }
 0x4f5   : > { %v640_v2 = vpop.f32.mrb[6].mxu1 }
 0x4f6   : > { %645 = vrot.lane.b32.xlu1 %v640_v2, %s2219_s20  ;;  %v1895_v3 = vpop.f32.mrb[7].mxu1 }
 0x568   : > { %v646_v4 = vpop.permute.xlu1 %645 }
 0x569   : > { %v648_v5 = vsel %vm324_vm2, %v479_v0, %v646_v4 }
 0x56a   : > { %1905 = vmatmul.mubr.msk.f32.vlgmr.msra.gmra.mrb[2].mxu0 %vm185_vm0, %v648_v5 }
 0x56b   : > { %1934 = vmatprep.mubr.msk.f32.mxu0 %vm2212_vm1, %v2213_v13  ;;  %2029 = vmatpush3.bf16.msra.mxu0 %v2028_v36 }
 0x56c   : > { %2030 = vmatprep.subr.bf16.mxu0 %v2211_v10 }
 0x56f   : > { %2032 = vmatpush3.bf16.msra.mxu0 %v2031_v40 }
 0x570   : > { %2033 = vmatprep.subr.bf16.mxu0 %v2211_v10 }
 0x573   : > { %2035 = vmatpush3.bf16.msra.mxu0 %v2034_v43 }
 0x574   : > { %2036 = vmatprep.subr.bf16.mxu0 %v2211_v10 }
 0x577   : > { %2038 = vmatpush3.bf16.msra.mxu0 %v2037_v46 }
 0x578   : > { %1958 = vmatprep.subr.mxu0 %v2213_v13 }
 0x63d   : > { %v722_v7 = vpop.f32.mrb[2].mxu0 }
 0x63e   : > { %v723_v8 = vadd.f32 %v1770_v6, %v722_v7  ;;  %v1906_v9 = vpop.f32.mrb[3].mxu0  ;;  %v946_v7 = vld [vmem:[%s2649_s2 + $0xb8] sm:$0xff] }
 0x640   : > { %v726_v11 = vadd.f32 %v723_v8, %v2325_v23  ;;  %v229_v23 = vld [vmem:[%s2649_s2 + $0x68] sm:$0xff]  ;;  %v947_v8 = vld [vmem:[%s2649_s2 + $0xc0] sm:$0xff] }
 0x641   : > { %v2025_v24 = vpack.c.bf16 %v229_v23, %v228_v22  ;;  %v2040_v9 = vpack.c.bf16 %v947_v8, %v946_v7 }
 0x642   : > { %v727_v12 = vsel %vm185_vm0, %v726_v11, 0.0 }
 0x643   : > { %728 = vadd.xlane.f32.xlu1 %v727_v12  ;;  %2026 = vmatpush3.bf16.msra.mxu1 %v2025_v24  ;;  %v949_v12 = vld [vmem:[%s2649_s2 + $0xd0] sm:$0xff] }
 0x644   : > { %2039 = vmatprep.subr.bf16.mxu1 %v2211_v10  ;;  %v1780_v24 = vld [vmem:[%s2649_s2 + $0xb0] ss:$0 sm:$0xff] }
 0x6d0   : > { %v729_v14 = vpop.xlane.xlu1 %728 }
 0x6d1   : > { %v730_v15 = vmul.f32 0.03125, %v729_v14 }
 0x6d3   : > { %v731_v16 = vsub.f32 %v726_v11, %v730_v15  ;;  %v948_v11 = vld [vmem:[%s2649_s2 + $0xc8] sm:$0xff] }
 0x6d4   : > { %v2043_v14 = vpack.c.bf16 %v949_v12, %v948_v11  ;;  %v955_v11 = vld [vmem:[%s2649_s2 + $0x100] sm:$0xff] }
 0x6d5   : > { %v732_v17 = vmul.f32 %v731_v16, %v731_v16 }
 0x6d7   : > { %v733_v18 = vsel %vm185_vm0, %v732_v17, 0.0 }
 0x6d8   : > { %734 = vadd.xlane.f32.xlu0 %v733_v18 }
 0x765   : > { %v735_v25 = vpop.xlane.xlu0 %734 }
 0x766   : > { %v736_v26 = vmul.f32 0.03125, %v735_v25 }
 0x768   : > { %v737_v27 = vadd.f32 1e-12, %v736_v26 }
 0x76a   : > { %2127 = vrsqrt.f32 %v737_v27 }
 0x774   : > { %v2128_v28 = vpop.eup %2127 }
 0x775   : > { %v739_v30 = vmul.f32 %v2128_v28, %v731_v16 }
 0x777   : > { %v744_v32 = vmul.f32 %v1772_v29, %v739_v30 }
 0x779   : > { %v749_v33 = vadd.f32 %v1773_v31, %v744_v32 }
 0x77b   : > { %1916 = vmatmul.mubr.msk.f32.vlgmr.msra.gmra.mrb[8].mxu1 %vm185_vm0, %v749_v33 }
 0x77c   : > { %1945 = vmatprep.mubr.msk.f32.mxu1 %vm2212_vm1, %v2213_v13  ;;  %2041 = vmatpush3.bf16.msra.mxu1 %v2040_v9 }
 0x77d   : > { %2042 = vmatprep.subr.bf16.mxu1 %v2211_v10 }
 0x780   : > { %2044 = vmatpush3.bf16.msra.mxu1 %v2043_v14  ;;  %v956_v14 = vld [vmem:[%s2649_s2 + $0x108] sm:$0xff] }
 0x781   : > { %1948 = vmatprep.subr.mxu1 %v2213_v13 }
 0x84e   : > { %v823_v48 = vpop.f32.mrb[8].mxu1 }
 0x84f   : > { %v824_v49 = vadd.f32 %v1774_v47, %v823_v48  ;;  %v1917_v50 = vpop.f32.mrb[9].mxu1 }
 0x851   : > { %v828_v51 = vmul.f32 0.044715, %v824_v49  ;;  %v827_v57 = vmul.f32 0.5, %v824_v49 }
 0x853   : > { %v829_v52 = vmul.f32 %v828_v51, %v824_v49  ;;  %v950_v51 = vld [vmem:[%s2649_s2 + $0xd8] sm:$0xff] }
 0x855   : > { %v830_v53 = vmul.f32 %v829_v52, %v824_v49  ;;  %v951_v52 = vld [vmem:[%s2649_s2 + $0xe0] sm:$0xff] }
 0x857   : > { %v831_v54 = vadd.f32 %v830_v53, %v824_v49  ;;  %v952_v53 = vld [vmem:[%s2649_s2 + $0xe8] sm:$0xff] }
 0x859   : > { %v832_v55 = vmul.f32 0.7978846, %v831_v54  ;;  %v2046_v54 = vpack.c.bf16 %v951_v52, %v950_v51 }
 0x85b   : > { %2129 = vtanh.f32 %v832_v55  ;;  %v953_v55 = vld [vmem:[%s2649_s2 + $0xf0] sm:$0xff] }
 0x865   : > { %v2130_v56 = vpop.eup %2129 }
 0x866   : > { %v834_v58 = vadd.f32 1.0, %v2130_v56  ;;  %v2049_v56 = vpack.c.bf16 %v953_v55, %v952_v53 }
 0x868   : > { %v835_v59 = vmul.f32 %v834_v58, %v827_v57 }
 0x86a   : > { %1935 = vmatmul.mubr.msk.f32.vlgmr.msra.gmra.mrb[4].mxu0 %vm840_vm4, %v835_v59 }
 0x86b   : > { %1960 = vmatprep.mubr.msk.f32.mxu0 %vm2212_vm1, %v2213_v13 }
 0x93d   : > { %v910_v61 = vpop.f32.mrb[4].mxu0 }
 0x93e   : > { %v911_v62 = vadd.f32 %v1776_v60, %v910_v61  ;;  %v1936_v63 = vpop.f32.mrb[5].mxu0 }
 0x93f   : > { %v1788_v63 = vld [vmem:[%s2649_s2 + $0xb1] ss:$0 sm:$0xff] }
 0x940   : > { %v914_v0 = vadd.f32 %v911_v62, %v749_v33 }
 0x942   : > { %v915_v1 = vsel %vm185_vm0, %v914_v0, 0.0 }
 0x943   : > { %916 = vadd.xlane.f32.xlu1 %v915_v1 }
 0x9d0   : > { %v917_v2 = vpop.xlane.xlu1 %916 }
 0x9d1   : > { %v918_v3 = vmul.f32 0.03125, %v917_v2 }
 0x9d3   : > { %v919_v4 = vsub.f32 %v914_v0, %v918_v3 }
 0x9d5   : > { %v920_v5 = vmul.f32 %v919_v4, %v919_v4 }
 0x9d7   : > { %v921_v6 = vsel %vm185_vm0, %v920_v5, 0.0 }
 0x9d8   : > { %922 = vadd.xlane.f32.xlu1 %v921_v6 }
 0xa65   : > { %v923_v15 = vpop.xlane.xlu1 %922 }
 0xa66   : > { %v924_v16 = vmul.f32 0.03125, %v923_v15  ;;  %v957_v15 = vld [vmem:[%s2649_s2 + $0x110] sm:$0xff] }
 0xa68   : > { %v925_v17 = vadd.f32 1e-12, %v924_v16  ;;  %v2055_v16 = vpack.c.bf16 %v957_v15, %v956_v14 }
 0xa6a   : > { %2131 = vrsqrt.f32 %v925_v17 }
 0xa74   : > { %v2132_v18 = vpop.eup %2131 }
 0xa75   : > { %v927_v20 = vmul.f32 %v2132_v18, %v919_v4 }
 0xa77   : > { %v932_v22 = vmul.f32 %v1778_v19, %v927_v20 }
 0xa79   : > { %v2474_v23 = vadd.f32 %v1779_v21, %v932_v22  ;;  %v1790_v21 = vld [vmem:[%s2649_s2 + $0xb2] ss:$0 sm:$0xff] }
 0xa7b   : > { %1946 = vmatmul.mubr.msk.f32.vlgmr.msra.gmra.mrb[10].mxu1 %vm185_vm0, %v2474_v23 }
 0xa7c   : > { %1950 = vmatprep.mubr.msk.f32.mxu1 %vm2212_vm1, %v2213_v13 }
 0xb4e   : > { %v1039_v25 = vpop.f32.mrb[10].mxu1 }
 0xb4f   : > { %v1040_v26 = vadd.f32 %v1780_v24, %v1039_v25  ;;  %v1947_v27 = vpop.f32.mrb[11].mxu1  ;;  %v1791_v24 = vld [vmem:[%s2649_s2 + $0xb3] ss:$0 sm:$0xff] }
 0xb50   : > { %v958_v27 = vld [vmem:[%s2649_s2 + $0x118] sm:$0xff] }
 0xb51   : > { %1205 = vrot.lane.b32.xlu0 %v1040_v26, %s2216_s28  ;;  %1044 = vrot.lane.b32.xlu1 %v1040_v26, %s2215_s27  ;;  %s2151_s27 = sshll.u32 %s2220_s16, 4  ;;  %s2152_s27 = int_to_ptr.vmem [resolvable:$false] %s2151_s27 }
 0xb52   : > { %s2153_s28 = scalar_lea.vmem %s2152_s27, 32 }
 0xb55   : > { %1203 = vrot.lane.b32.xlu1 %v1040_v26, %s2214_s26 }
 0xbc3   : > { %v1206_v28 = vpop.permute.xlu0 %1205  ;;  %v1045_v29 = vpop.permute.xlu1 %1044 }
 0xbc4   : > { %1949 = vmatpush3.xpose.msk.msra.mxu1 %vm324_vm2, %v1045_v29  ;;  %1959 = vmatpush3.xpose.msk.msra.mxu0 %vm324_vm2, %v1206_v28  ;;  %v959_v28 = vld [vmem:[%s2649_s2 + $0x120] sm:$0xff] }
 0xbc5   : > { %1953 = vmatprep.subr.mxu1 %v2213_v13  ;;  %2045 = vmatprep.subr.bf16.mxu0 %v2211_v10  ;;  %v2058_v29 = vpack.c.bf16 %v959_v28, %v958_v27 }
 0xbc7   : > { %1951 = vmatmul.mubr.msk.f32.vlgmr.msra.gmra.mrb[12].mxu1 %vm324_vm2, %v1040_v26  ;;  %v1204_v30 = vpop.permute.xlu1 %1203 }
 0xbc8   : > { %1961 = vmatmul.mubr.msk.f32.vlgmr.msra.gmra.mrb[6].mxu0 %vm324_vm2, %v1204_v30  ;;  %1955 = vmatprep.mubr.msk.f32.mxu1 %vm2212_vm1, %v2213_v13  ;;  %v960_v30 = vld [vmem:[%s2649_s2 + $0x128] sm:$0xff] }
 0xbc9   : > { %1976 = vmatprep.mubr.msk.f32.mxu0 %vm2212_vm1, %v2213_v13  ;;  %2047 = vmatpush3.bf16.msra.mxu0 %v2046_v54 }
 0xbca   : > { %2048 = vmatprep.subr.bf16.mxu0 %v2211_v10 }
 0xbcd   : > { %2050 = vmatpush3.bf16.msra.mxu0 %v2049_v56 }
 0xbce   : > { %2057 = vmatprep.subr.bf16.mxu0 %v2211_v10 }
 0xc9a   : > { %v1116_v31 = vpop.f32.mrb[12].mxu1 }
 0xc9b   : > { %v1117_v32 = vadd.f32 %v1116_v31, %v2351_v37  ;;  %v1952_v33 = vpop.f32.mrb[13].mxu1  ;;  %v1277_v34 = vpop.f32.mrb[6].mxu0  ;;  %v961_v31 = vld [vmem:[%s2649_s2 + $0x130] sm:$0xff] }
 0xc9c   : > { %v1278_v35 = vadd.f32 %v1277_v34, %v2351_v37  ;;  %v1962_v36 = vpop.f32.mrb[7].mxu0  ;;  %v962_v33 = vld [vmem:[%s2649_s2 + $0x138] sm:$0xff]  ;;  %v963_v34 = vld [vmem:[%s2649_s2 + $0x140] sm:$0xff] }
 0xc9d   : > { %v1120_v38 = vmul.f32 1.442695, %v1117_v32  ;;  %v2061_v32 = vpack.c.bf16 %v961_v31, %v960_v30  ;;  %v964_v36 = vld [vmem:[%s2649_s2 + $0x148] sm:$0xff] }
 0xc9e   : > { %v1281_v39 = vmul.f32 1.442695, %v1278_v35  ;;  %v2064_v35 = vpack.c.bf16 %v963_v34, %v962_v33 }
 0xc9f   : > { %2133 = vpow2.f32 %v1120_v38  ;;  %v965_v38 = vld [vmem:[%s2649_s2 + $0x150] sm:$0xff] }
 0xca0   : > { %2135 = vpow2.f32 %v1281_v39  ;;  %v2067_v39 = vpack.c.bf16 %v965_v38, %v964_v36 }
 0xca9   : > { %v2134_v40 = vpop.eup %2133 }
 0xcaa   : > { %v2136_v41 = vpop.eup %2135  ;;  %v1122_v42 = vsel %vm401_vm3, %v2134_v40, 0.0 }
 0xcab   : > { %1123 = vadd.xlane.f32.xlu1 %v1122_v42  ;;  %v1283_v43 = vsel %vm401_vm3, %v2136_v41, 0.0 }
 0xcac   : > { %1284 = vadd.xlane.f32.xlu0 %v1283_v43 }
 0xcbc   : > { %1127 = vrot.lane.b32.xlu1 %v1040_v26, %s2217_s24 }
 0xcc2   : > { %1288 = vrot.lane.b32.xlu0 %v1040_v26, %s2218_s5 }
 0xd38   : > { %v1124_v44 = vpop.xlane.xlu1 %1123 }
 0xd39   : > { %2137 = vrcp.f32 %v1124_v44  ;;  %v1285_v37 = vpop.xlane.xlu0 %1284 }
 0xd3a   : > { %2139 = vrcp.f32 %v1285_v37 }
 0xd3c   : > { %v1128_v45 = vpop.permute.xlu1 %1127 }
 0xd3d   : > { %1954 = vmatpush3.msra.mxu1 %v1128_v45  ;;  %v1289_v49 = vpop.permute.xlu0 %1288 }
 0xd3e   : > { %1963 = vmatprep.subr.mxu1 %v2213_v13 }
 0xd43   : > { %v2138_v46 = vpop.eup %2137 }
 0xd44   : > { %v1126_v47 = vmul.f32 %v2138_v46, %v2134_v40  ;;  %v2140_v48 = vpop.eup %2139  ;;  %v1792_v40 = vld [vmem:[%s2649_s2 + $0xb4] ss:$0 sm:$0xff] }
 0xd45   : > { %v1287_v50 = vmul.f32 %v2140_v48, %v2136_v41 }
 0xd46   : > { %1956 = vmatmul.mubr.msk.f32.vlgmr.msra.gmra.mrb[14].mxu1 %vm401_vm3, %v1126_v47 }
 0xd47   : > { %1964 = vmatpush3.msra.mxu1 %v1289_v49  ;;  %1965 = vmatprep.mubr.msk.f32.mxu1 %vm2212_vm1, %v2213_v13 }
 0xd48   : > { %2051 = vmatprep.subr.bf16.mxu1 %v2211_v10 }
 0xd4a   : > { %1966 = vmatmul.mubr.msk.f32.vlgmr.msra.gmra.mrb[16].mxu1 %vm401_vm3, %v1287_v50 }
 0xd4b   : > { %1987 = vmatprep.mubr.msk.f32.mxu1 %vm2212_vm1, %v2213_v13 }
 0xe19   : > { %v1199_v57 = vpop.f32.mrb[14].mxu1 }
 0xe1a   : > { %v1957_v58 = vpop.f32.mrb[15].mxu1 }
 0xe1d   : > { %v1360_v59 = vpop.f32.mrb[16].mxu1 }
 0xe1e   : > { %1365 = vrot.lane.b32.xlu1 %v1360_v59, %s2219_s20  ;;  %v1967_v60 = vpop.f32.mrb[17].mxu1  ;;  %s170_s20 = sand.u32 1, %s2201_s13  }
 0xe1f   : > { %s171_s8 = scalar_lea.vmem [#allocation2], %s170_s20  ;;  %s1679_s19 = scalar_lea.sflag [#allocation3], %s170_s20 }
 0xe20   : > { %s1691_s9 = sshll.u32 %s171_s8, 4  ;;  %s2607_s9 = int_to_ptr.vmem [resolvable:$true] %s1691_s9 }
 0xe21   : > { %s2147_s26 = scalar_lea.vmem %s2607_s9, 16  ;;  %p2154_p0 = scmp.lt.s32.totalorder %s2607_s9, %s2152_s27 }
 0xe22   : > { %p2148_p11 = scmp.ne.s32.totalorder %s2607_s9, %s2147_s26  ;;  %p2155_p1 = scmp.lt.s32.totalorder %s2153_s28, %s2147_s26 }
 0xe24   : > { %p2149_p12 = pnand %p2148_p11, %p2279_p5  ;;  %p2156_p2 = por %p2155_p1, %p2154_p0 }
 0xe26   : > { %p2150_p13 = pneg %p2149_p12 }
 0xe28   : > { %p2157_p3 = pnand %p2156_p2, %p2150_p13 }
 0xe90   : > { %v1366_v61 = vpop.permute.xlu1 %1365 }
 0xe91   : > { %v1368_v62 = vsel %vm324_vm2, %v1199_v57, %v1366_v61 }
 0xe92   : > { %1977 = vmatmul.mubr.msk.f32.vlgmr.msra.gmra.mrb[8].mxu0 %vm185_vm0, %v1368_v62 }
 0xe93   : > { %2006 = vmatprep.mubr.msk.f32.mxu0 %vm2212_vm1, %v2213_v13  ;;  %v954_v13 = vld [vmem:[%s2649_s2 + $0xf8] sm:$0xff]  ;;  %2059 = vmatpush3.bf16.msra.mxu0 %v2058_v29 }
 0xe94   : > { %v2052_v12 = vpack.c.bf16 %v955_v11, %v954_v13  ;;  %2060 = vmatprep.subr.bf16.mxu0 %v2211_v10 }
 0xe96   : > { %2053 = vmatpush3.bf16.msra.mxu1 %v2052_v12 }
 0xe97   : > { %2054 = vmatprep.subr.bf16.mxu1 %v2211_v10  ;;  %2062 = vmatpush3.bf16.msra.mxu0 %v2061_v32 }
 0xe98   : > { %2063 = vmatprep.subr.bf16.mxu0 %v2211_v10 }
 0xe9a   : > { %2056 = vmatpush3.bf16.msra.mxu1 %v2055_v16 }
 0xe9b   : > { %2065 = vmatpush3.bf16.msra.mxu0 %v2064_v35 }
 0xe9c   : > { %2066 = vmatprep.subr.bf16.mxu0 %v2211_v10  ;;  %v1794_v10 = vld [vmem:[%s2649_s2 + $0xb5] ss:$0 sm:$0xff] }
 0xe9f   : > { %2068 = vmatpush3.bf16.msra.mxu0 %v2067_v39 }
 0xf65   : > { %v1442_v0 = vpop.f32.mrb[8].mxu0 }
 0xf66   : > { %v1443_v1 = vadd.f32 %v1788_v63, %v1442_v0  ;;  %v1978_v2 = vpop.f32.mrb[9].mxu0 }
 0xf68   : > { %v1446_v3 = vadd.f32 %v1443_v1, %v2474_v23  ;;  %v1657_v1 = vsel %vm185_vm0, %v2474_v23, 0.0 }
 0xf69   : > { %v1658_v2 = vrot.slane %v1657_v1, 4 }
 0xf6a   : > { %v1447_v4 = vsel %vm185_vm0, %v1446_v3, 0.0 }
 0xf6b   : > { %1448 = vadd.xlane.f32.xlu1 %v1447_v4  ;;  %v1796_v4 = vld [vmem:[%s2649_s2 + $0xb6] ss:$0 sm:$0xff] }
 0xff8   : > { %v1449_v5 = vpop.xlane.xlu1 %1448 }
 0xff9   : > { %v1450_v6 = vmul.f32 0.03125, %v1449_v5  ;;  %v1659_v5 = vadd.f32 %v1658_v2, %v1657_v1 }
 0xffb   : > { %v1451_v7 = vsub.f32 %v1446_v3, %v1450_v6 }
 0xffd   : > { %v1452_v8 = vmul.f32 %v1451_v7, %v1451_v7 }
 0xfff   : > { %v1453_v9 = vsel %vm185_vm0, %v1452_v8, 0.0 }
0x1000   : > { %1454 = vadd.xlane.f32.xlu0 %v1453_v9  ;;  %v1660_v9 = vrot.slane %v1659_v5, 2 }
0x1002   : > { %v1661_v23 = vadd.f32 %v1660_v9, %v1659_v5 }
0x1004   : > { %v1662_v15 = vrot.slane %v1661_v23, 1 }
0x108d   : > { %v1455_v17 = vpop.xlane.xlu0 %1454 }
0x108e   : > { %v1456_v18 = vmul.f32 0.03125, %v1455_v17 }
0x1090   : > { %v1457_v19 = vadd.f32 1e-12, %v1456_v18  ;;  %v1663_v18 = vadd.f32 %v1662_v15, %v1661_v23 }
0x1092   : > { %2141 = vrsqrt.f32 %v1457_v19 }
0x109c   : > { %v2142_v20 = vpop.eup %2141 }
0x109d   : > { %v1459_v22 = vmul.f32 %v2142_v20, %v1451_v7  ;;  %v1797_v7 = vld [vmem:[%s2649_s2 + $0xb7] ss:$0 sm:$0xff] }
0x109f   : > { %v1464_v25 = vmul.f32 %v1790_v21, %v1459_v22  ;;  %v1665_v21 = vmul.f32 0.125, %v1663_v18 }
0x10a1   : > { %v1469_v26 = vadd.f32 %v1791_v24, %v1464_v25 }
0x10a3   : > { %1988 = vmatmul.mubr.msk.f32.vlgmr.msra.gmra.mrb[18].mxu1 %vm185_vm0, %v1469_v26 }
0x1176   : > { %v1543_v41 = vpop.f32.mrb[18].mxu1 }
0x1177   : > { %v1544_v42 = vadd.f32 %v1792_v40, %v1543_v41  ;;  %v1989_v43 = vpop.f32.mrb[19].mxu1 }
0x1179   : > { %v1548_v44 = vmul.f32 0.044715, %v1544_v42  ;;  %v1547_v49 = vmul.f32 0.5, %v1544_v42 }
0x117b   : > { %v1549_v37 = vmul.f32 %v1548_v44, %v1544_v42 }
0x117d   : > { %v1550_v45 = vmul.f32 %v1549_v37, %v1544_v42 }
0x117f   : > { %v1551_v46 = vadd.f32 %v1550_v45, %v1544_v42 }
0x1181   : > { %v1552_v47 = vmul.f32 0.7978846, %v1551_v46 }
0x1183   : > { %2143 = vtanh.f32 %v1552_v47 }
0x118d   : > { %v2144_v48 = vpop.eup %2143 }
0x118e   : > { %v1554_v50 = vadd.f32 1.0, %v2144_v48 }
0x1190   : > { %v1555_v51 = vmul.f32 %v1554_v50, %v1547_v49 }
0x1192   : > { %2007 = vmatmul.mubr.msk.f32.vlgmr.msra.gmra.mrb[10].mxu0 %vm840_vm4, %v1555_v51 }
0x1265   : > { %v1629_v52 = vpop.f32.mrb[10].mxu0 }
0x1266   : > { %v1630_v53 = vadd.f32 %v1794_v10, %v1629_v52  ;;  %v2008_v54 = vpop.f32.mrb[11].mxu0 }
0x1268   : > { %v1633_v55 = vadd.f32 %v1630_v53, %v1469_v26 }
0x126a   : > { %v1634_v56 = vsel %vm185_vm0, %v1633_v55, 0.0 }
0x126b   : > { %1635 = vadd.xlane.f32.xlu0 %v1634_v56 }
0x12f8   : > { %v1636_v57 = vpop.xlane.xlu0 %1635 }
0x12f9   : > { %v1637_v58 = vmul.f32 0.03125, %v1636_v57 }
0x12fb   : > { %v1638_v59 = vsub.f32 %v1633_v55, %v1637_v58 }
0x12fd   : > { %v1639_v60 = vmul.f32 %v1638_v59, %v1638_v59 }
0x12ff   : > { %v1640_v61 = vsel %vm185_vm0, %v1639_v60, 0.0 }
0x1300   : > { %1641 = vadd.xlane.f32.xlu1 %v1640_v61 }
0x138d   : > { %v1642_v62 = vpop.xlane.xlu1 %1641 }
0x138e   : > { %v1643_v63 = vmul.f32 0.03125, %v1642_v62 }
0x1390   : > { %v1644_v0 = vadd.f32 1e-12, %v1643_v63 }
0x1392   : > { %2145 = vrsqrt.f32 %v1644_v0 }
0x139c   : > { %v2146_v3 = vpop.eup %2145 }
0x139d   : > { %v1646_v6 = vmul.f32 %v2146_v3, %v1638_v59 }
0x139f   : > { %v1651_v8 = vmul.f32 %v1796_v4, %v1646_v6 }
0x13a1   : > { %v1656_v13 = vadd.f32 %v1797_v7, %v1651_v8 }
0x13a3   : > { %v1666_v11 = vsel %vm185_vm0, %v1656_v13, 0.0 }
0x13a4   : > { %v1667_v12 = vrot.slane %v1666_v11, 4 }
0x13a6   : > { %v1668_v14 = vadd.f32 %v1667_v12, %v1666_v11 }
0x13a8   : > { %v1669_v16 = vrot.slane %v1668_v14, 2 }
0x13aa   : > { %v1670_v17 = vadd.f32 %v1669_v16, %v1668_v14 }
0x13ac   : > { %v1671_v19 = vrot.slane %v1670_v17, 1 }
0x13ae   : > { %v1672_v20 = vadd.f32 %v1671_v19, %v1670_v17 }
0x13b0   : > { %v1673_v22 = vmul.f32 0.125, %v1672_v20 }
0x13b2   : > { %v1674_v24 = vadd.f32 %v1673_v22, %v1665_v21 }
0x13b4   : > { %v1675_v25 = vmul.f32 0.5, %v1674_v24 }
0x13b6   : > { %1677 = vst.msk [vmem:[%s171_s8] sm:$0x1] %vm1676_vm5, %v1675_v25 }
0x13b7   : > { %2160 = shalt.err (!%p2157_p3)
}
0x13b8   : > { %s2161_s24 = scalar_lea.hbm %s2605_s17, 16  ;;  %s2165_s29 = scalar_lea.hbm %s2650_s3, 32 }
0x13b9   : > { %p2162_p4 = scmp.ne.s32.totalorder %s2605_s17, %s2161_s24  ;;  %p2166_p9 = scmp.lt.u32.totalorder %s2605_s17, %s2650_s3 }
0x13ba   : > { %p2167_p10 = scmp.lt.u32.totalorder %s2165_s29, %s2161_s24  ;;  %p2169_p12 = scmp.lt.u32.totalorder %s2161_s24, %s2605_s17 }
0x13bb   : > { %p2163_p7 = pnand %p2162_p4, %p2279_p5 }
0x13bc   : > { %p2168_p11 = por %p2167_p10, %p2166_p9 }
0x13bd   : > { %p2164_p8 = pneg %p2163_p7 }
0x13be   : > { %p2170_p13 = por %p2169_p12, %p2168_p11 }
0x13c0   : > { %p2171_p0 = pnand %p2170_p13, %p2164_p8 }
0x13c2   : > { %2174 = shalt.err (!%p2171_p0)
}
0x13c3   : > { %2069 = dma.vmem_to_hbm [thread:$0]  (%p2279_p5), %s2607_s9, 16, %s2605_s17, %s1679_s19  }
0x13c4 PF: > { %p2075_p1 = scmp.ge.s32.totalorder %s2209_s15, 2  ;;  %s1703_s6 = sand.u32 1, %s2197_s12  }
0x13c5   : > { %s1704_s20 = scalar_lea.sflag [#allocation3], %s1703_s6 }
0x13c6   : > { %p2072_p2 = pnand %p2075_p1, %p2283_p6 }
0x13c8   : > { %2192 = dma.done.wait (!%p2072_p2), %s1704_s20, 16  }
0x13c9   : > { %2194 = vsyncadd (!%p2072_p2), %s1704_s20, 4294967280  ;;  %p13_p3 = scmp.ge.s32.totalorder %s2266_s18, 4   ;;  %s2653_s12 = smov %s2201_s13 }
0x13ca   : > { %s2654_s13 = smov %s2205_s14  ;;  %s2655_s14 = smov %s2277_s21 }
0x13cb   : > { %s2656_s15 = smov %s2266_s18  ;;  %15 = sbr.rel (!%p13_p3) target bundleno = 3 (0x3), region = 70 }
0x13d2   :  { %1708 = vsyncpa [#allocation3], 1 }
0x13d3   :  { %1710 = vsyncpa [#allocation3 + $0x1], 1 }

</bundles_post_ra>
